<compile_context>
chip_gen: v5e
topology: v5e:2x2
jax: 0.10.0
libtpu: 0.0.40
codegen_flags: <defaults>
</compile_context>

<pallas_src>
import functools

import jax
import jax.numpy as jnp
import numpy as np
from jax import lax
from jax.experimental import pallas as pl
from jax.experimental.pallas import tpu as pltpu

BN_EPS = 1e-5


def _dw_bn_relu_kernel(x_ref, w_ref, g_ref, b_ref, o_ref, acc_ref, *, eps):
    # x_ref  : (B, H, W, CT)  input channel tile (NHWC)
    # w_ref  : (9, CT)        depthwise 3x3 taps, row k = (dy=k//3, dx=k%3)
    # g_ref  : (1, CT)        BN gamma
    # b_ref  : (1, CT)        BN beta
    # o_ref  : (B, H, W, CT)  output tile
    # acc_ref: (B, H, W, CT)  persistent f32 accumulator scratch
    B, H, W, CT = x_ref.shape

    w = w_ref[...].astype(jnp.float32)  # (9, CT)

    # Column-validity masks for the W-direction (sublane) shifts, built once
    # and shared by all three row-groups (broadcast over B / rows is free).
    col = lax.broadcasted_iota(jnp.int32, (1, 1, W, CT), 2)
    has_left = col > 0            # input column x-1 exists
    has_right = col < (W - 1)     # input column x+1 exists

    def row_group(rows, dy):
        """3-tap horizontal conv of `rows` (B, R, W, CT) with taps w[3*dy+dx].

        The x-1 / x+1 neighbours are produced with pltpu.roll on the XLU plus
        a zero mask instead of sublane-misaligned halo slices.
        """
        t = rows.astype(jnp.float32)            # single cast per row-group
        # roll(+1): out[..., x, :] = t[..., x-1, :]  (wrapped column masked)
        left = jnp.where(has_left, pltpu.roll(t, shift=1, axis=2), 0.0)
        # roll(W-1) == roll(-1): out[..., x, :] = t[..., x+1, :]
        right = jnp.where(has_right, pltpu.roll(t, shift=W - 1, axis=2), 0.0)
        return (left * w[3 * dy + 0][None, None, None, :]
                + t * w[3 * dy + 1][None, None, None, :]
                + right * w[3 * dy + 2][None, None, None, :])

    # dy = 1 (same input row): contributes to every output row -> init acc.
    acc_ref[...] = row_group(x_ref[...], 1)
    if H > 1:
        # dy = 0 (input row y-1): output rows 1..H-1 read input rows 0..H-2.
        acc_ref[:, 1:H, :, :] += row_group(x_ref[:, 0:H - 1, :, :], 0)
        # dy = 2 (input row y+1): output rows 0..H-2 read input rows 1..H-1.
        acc_ref[:, 0:H - 1, :, :] += row_group(x_ref[:, 1:H, :, :], 2)

    # Conv bias intentionally omitted: training-mode BatchNorm subtracts the
    # batch mean, so a per-channel additive bias cancels exactly.
    # TODO(synk): re-add the bias if this kernel is ever reused with eval-mode
    # BN (running statistics) instead of batch statistics.

    # ---- batch statistics over (B, H, W): one fused traversal of acc -------
    # One-pass E[x^2] - E[x]^2 in f32 (clamped at 0); adequate for conv
    # activations, switch to two-pass if |mean| >> std ever matters.
    acc = acc_ref[...]
    inv_cnt = jnp.float32(1.0 / (B * H * W))
    s = jnp.sum(acc, axis=(0, 1, 2), keepdims=True)
    ss = jnp.sum(acc * acc, axis=(0, 1, 2), keepdims=True)
    mean = s * inv_cnt
    var = jnp.maximum(ss * inv_cnt - mean * mean, 0.0)

    scale = (g_ref[...][0][None, None, None, :].astype(jnp.float32)
             * lax.rsqrt(var + eps))
    shift = (b_ref[...][0][None, None, None, :].astype(jnp.float32)
             - mean * scale)
    o_ref[...] = jnp.maximum(acc * scale + shift, 0.0).astype(o_ref.dtype)


def _vmem_capacity_bytes():
    try:
        return int(pltpu.get_tpu_info().vmem_capacity_bytes)
    except Exception:
        return 64 << 20  # conservative (v7x-sized) fallback


def _pick_channel_tile(c_padded, B, H, W, itemsize, vmem_capacity):
    """Channel tile: a multiple of 128 dividing c_padded, generation-aware.

    Prefers an even number (>= 2) of tiles so dimension_semantics="parallel"
    can shard the grid across v7x's two TensorCores; otherwise the largest
    tile that fits the per-step VMEM budget.
    """
    # v5e/v6e expose 128 MiB of VMEM; v7x only 64 MiB per TensorCore.
    if vmem_capacity >= (100 << 20):
        budget = 48 << 20            # v5e / v6e
    else:
        budget = 24 << 20            # v7x: explicit headroom under 64 MiB
    # Per-element working set: double-buffered input + output, f32 accumulator
    # scratch, plus compiler temporaries (rolled taps / partials / masks).
    per_elem = 4 * itemsize + 4 + 16
    spatial = B * H * W

    candidates = [ct for ct in range(128, c_padded + 1, 128)
                  if c_padded % ct == 0]
    fitting = [ct for ct in candidates if spatial * ct * per_elem <= budget]
    if not fitting:
        # TODO(synk): add a spatial (H) grid axis with two-pass BN (pass 1:
        # conv + per-channel sum/sumsq accumulation, pass 2: normalize+ReLU)
        # for feature maps whose minimal channel tile exceeds the VMEM budget.
        raise ValueError(
            f"DW_bn_relu: no channel tile fits VMEM (B={B}, H={H}, W={W}, "
            f"C_padded={c_padded}); spatial tiling not implemented.")

    def n_tiles(ct):
        return c_padded // ct

    even_multi = [ct for ct in fitting if n_tiles(ct) >= 2 and n_tiles(ct) % 2 == 0]
    multi = [ct for ct in fitting if n_tiles(ct) >= 2]
    if even_multi:
        return max(even_multi)
    if multi:
        return max(multi)
    return max(fitting)


def dw_bn_relu(x, H, W, dw_weight, dw_bias, bn_gamma, bn_beta, eps=BN_EPS):
    """x: (B, N, C) with N = H*W.  dw_weight: (C, 1, 3, 3) PyTorch layout."""
    B, N, C = x.shape
    assert N == H * W

    # (B, N, C) -> (B, H, W, C): NHWC, channels on lanes.
    x_nhwc = x.reshape(B, H, W, C)

    # (C, 1, 3, 3) -> (3, 3, C) -> (9, C): row k = (dy=k//3, dx=k%3).
    w9 = jnp.transpose(dw_weight[:, 0, :, :], (1, 2, 0)).reshape(9, C)
    g = bn_gamma.reshape(1, C)
    b = bn_beta.reshape(1, C)
    # dw_bias is not passed to the kernel: under training-mode BN a per-channel
    # additive bias cancels exactly (mean/variance are shift-invariant).
    del dw_bias

    # Zero-pad channels to a multiple of 128 for lane-dense vregs + unmasked
    # stores.  Padded channels produce exactly 0 and are sliced away below.
    c_padded = max(128, -(-C // 128) * 128)
    if c_padded != C:
        pc = c_padded - C
        x_nhwc = jnp.pad(x_nhwc, ((0, 0), (0, 0), (0, 0), (0, pc)))
        w9 = jnp.pad(w9, ((0, 0), (0, pc)))
        g = jnp.pad(g, ((0, 0), (0, pc)))
        b = jnp.pad(b, ((0, 0), (0, pc)))

    itemsize = jnp.dtype(x.dtype).itemsize
    vmem_capacity = _vmem_capacity_bytes()
    CT = _pick_channel_tile(c_padded, B, H, W, itemsize, vmem_capacity)
    n_ct = c_padded // CT
    vmem_limit = (96 << 20) if vmem_capacity >= (100 << 20) else (48 << 20)

    kernel = functools.partial(_dw_bn_relu_kernel, eps=eps)

    out = pl.pallas_call(
        kernel,
        out_shape=jax.ShapeDtypeStruct((B, H, W, c_padded), x.dtype),
        grid_spec=pltpu.PrefetchScalarGridSpec(
            num_scalar_prefetch=0,
            grid=(n_ct,),
            in_specs=[
                pl.BlockSpec((B, H, W, CT), lambda c: (0, 0, 0, c)),
                pl.BlockSpec((9, CT), lambda c: (0, c)),
                pl.BlockSpec((1, CT), lambda c: (0, c)),
                pl.BlockSpec((1, CT), lambda c: (0, c)),
            ],
            out_specs=pl.BlockSpec((B, H, W, CT), lambda c: (0, 0, 0, c)),
            scratch_shapes=[pltpu.VMEM((B, H, W, CT), jnp.float32)],
        ),
        compiler_params=pltpu.CompilerParams(
            # Channel tiles are fully independent (per-channel BN statistics):
            # "parallel" lets v7x shard the grid across its two TensorCores.
            dimension_semantics=("parallel",),
            vmem_limit_bytes=vmem_limit,
        ),
    )(x_nhwc, w9, g, b)

    if c_padded != C:
        out = out[..., :C]
    # (B, H, W, C) -> (B, N, C)  (== flatten(2).transpose(1, 2) of NCHW).
    return out.reshape(B, N, C)


def _reference(x, H, W, dw_weight, dw_bias, bn_gamma, bn_beta, eps=BN_EPS):
    """Pure-JAX reference mirroring the PyTorch forward (training-mode BN)."""
    B, N, C = x.shape
    x_nhwc = x.reshape(B, H, W, C)
    k_hwio = jnp.transpose(dw_weight, (2, 3, 1, 0))  # (3, 3, 1, C)
    y = lax.conv_general_dilated(
        x_nhwc, k_hwio, window_strides=(1, 1), padding="SAME",
        dimension_numbers=("NHWC", "HWIO", "NHWC"),
        feature_group_count=C)
    y = y + dw_bias[None, None, None, :]
    mean = jnp.mean(y, axis=(0, 1, 2), keepdims=True)
    var = jnp.mean((y - mean) ** 2, axis=(0, 1, 2), keepdims=True)
    y = (y - mean) * lax.rsqrt(var + eps)
    y = y * bn_gamma[None, None, None, :] + bn_beta[None, None, None, :]
    y = jnp.maximum(y, 0.0)
    return y.reshape(B, N, C)


if __name__ == "__main__":
    key = jax.random.PRNGKey(0)

    def run_case(B, C, H, W):
        N = H * W
        kx, kw, kb, kg, kbeta = jax.random.split(jax.random.fold_in(key, C), 5)
        x = jax.random.normal(kx, (B, N, C), dtype=jnp.float32)
        dw_weight = jax.random.normal(kw, (C, 1, 3, 3), dtype=jnp.float32) * 0.1
        dw_bias = jax.random.normal(kb, (C,), dtype=jnp.float32) * 0.1
        bn_gamma = 1.0 + 0.1 * jax.random.normal(kg, (C,), dtype=jnp.float32)
        bn_beta = 0.1 * jax.random.normal(kbeta, (C,), dtype=jnp.float32)

        out = dw_bn_relu(x, H, W, dw_weight, dw_bias, bn_gamma, bn_beta)
        out = jax.block_until_ready(out)

        ref = _reference(x, H, W, dw_weight, dw_bias, bn_gamma, bn_beta)
        np.testing.assert_allclose(np.asarray(out), np.asarray(ref),
                                   rtol=2e-4, atol=2e-4)

    # Lane-dense case: 2 channel tiles of 128 -> grid=(2,), pipelined/parallel.
    run_case(B=2, C=256, H=8, W=8)
    # Small-C case: channels zero-padded to 128 (lane-dense), output sliced.
    run_case(B=2, C=32, H=8, W=8)

    print("KERNEL_OK")
</pallas_src>

<mosaic_0001>
module attributes {stable_mosaic.version = 11 : i64} {
  func.func @_dw_bn_relu_kernel(%arg0: i32, %arg1: memref<2x8x8x128xf32, #tpu.memory_space<vmem>>, %arg2: memref<9x128xf32, #tpu.memory_space<vmem>>, %arg3: memref<1x128xf32, #tpu.memory_space<vmem>>, %arg4: memref<1x128xf32, #tpu.memory_space<vmem>>, %arg5: memref<2x8x8x128xf32, #tpu.memory_space<vmem>>, %arg6: memref<2x8x8x128xf32, #tpu.memory_space<vmem>>) attributes {dimension_semantics = [#tpu.dimension_semantics<parallel>], iteration_bounds = array<i64: 2>, scalar_prefetch = 0 : i64, scratch_operands = 1 : i64, tpu.core_type = #tpu.core_type<tc>, window_params = [{transform_indices = @transform_0, window_bounds = array<i64: 2, 8, 8, 128>}, {transform_indices = @transform_1, window_bounds = array<i64: 9, 128>}, {transform_indices = @transform_2, window_bounds = array<i64: 1, 128>}, {transform_indices = @transform_3, window_bounds = array<i64: 1, 128>}, {transform_indices = @transform_4, window_bounds = array<i64: 2, 8, 8, 128>}]} {
    %c0 = arith.constant 0 : index
    %c0_0 = arith.constant 0 : index
    %0 = vector.load %arg2[%c0, %c0_0] : memref<9x128xf32, #tpu.memory_space<vmem>>, vector<9x128xf32>
    %1 = tpu.iota {dimensions = array<i32: 2>} : vector<1x1x8x128xi32>
    %c0_i32 = arith.constant 0 : i32
    %2 = vector.broadcast %c0_i32 : i32 to vector<1x1x8x128xi32>
    %3 = arith.cmpi sgt, %1, %2 : vector<1x1x8x128xi32>
    %c7_i32 = arith.constant 7 : i32
    %4 = vector.broadcast %c7_i32 : i32 to vector<1x1x8x128xi32>
    %5 = arith.cmpi slt, %1, %4 : vector<1x1x8x128xi32>
    %c0_1 = arith.constant 0 : index
    %c0_2 = arith.constant 0 : index
    %c0_3 = arith.constant 0 : index
    %c0_4 = arith.constant 0 : index
    %6 = vector.load %arg1[%c0_1, %c0_2, %c0_3, %c0_4] : memref<2x8x8x128xf32, #tpu.memory_space<vmem>>, vector<2x8x8x128xf32>
    %c1_i32 = arith.constant 1 : i32
    %7 = tpu.dynamic_rotate %6 by %c1_i32 dim 2 : vector<2x8x8x128xf32>, i32 -> vector<2x8x8x128xf32>
    %cst = arith.constant 0.000000e+00 : f32
    %8 = vector.shape_cast %3 : vector<1x1x8x128xi1> to vector<1x1x8x128xi1>
    %9 = vector.broadcast %8 : vector<1x1x8x128xi1> to vector<2x8x8x128xi1>
    %10 = vector.broadcast %cst : f32 to vector<2x8x8x128xf32>
    %11 = arith.select %9, %7, %10 : vector<2x8x8x128xi1>, vector<2x8x8x128xf32>
    %c7_i32_5 = arith.constant 7 : i32
    %12 = tpu.dynamic_rotate %6 by %c7_i32_5 dim 2 : vector<2x8x8x128xf32>, i32 -> vector<2x8x8x128xf32>
    %cst_6 = arith.constant 0.000000e+00 : f32
    %13 = vector.shape_cast %5 : vector<1x1x8x128xi1> to vector<1x1x8x128xi1>
    %14 = vector.broadcast %13 : vector<1x1x8x128xi1> to vector<2x8x8x128xi1>
    %15 = vector.broadcast %cst_6 : f32 to vector<2x8x8x128xf32>
    %16 = arith.select %14, %12, %15 : vector<2x8x8x128xi1>, vector<2x8x8x128xf32>
    %17 = vector.extract_strided_slice %0 {offsets = [3, 0], sizes = [1, 128], strides = [1, 1]} : vector<9x128xf32> to vector<1x128xf32>
    %18 = vector.shape_cast %17 : vector<1x128xf32> to vector<128xf32>
    %19 = vector.shape_cast %18 : vector<128xf32> to vector<1x1x1x128xf32>
    %20 = vector.broadcast %19 : vector<1x1x1x128xf32> to vector<2x8x8x128xf32>
    %21 = arith.mulf %11, %20 : vector<2x8x8x128xf32>
    %22 = vector.extract_strided_slice %0 {offsets = [4, 0], sizes = [1, 128], strides = [1, 1]} : vector<9x128xf32> to vector<1x128xf32>
    %23 = vector.shape_cast %22 : vector<1x128xf32> to vector<128xf32>
    %24 = vector.shape_cast %23 : vector<128xf32> to vector<1x1x1x128xf32>
    %25 = vector.broadcast %24 : vector<1x1x1x128xf32> to vector<2x8x8x128xf32>
    %26 = arith.mulf %6, %25 : vector<2x8x8x128xf32>
    %27 = arith.addf %21, %26 : vector<2x8x8x128xf32>
    %28 = vector.extract_strided_slice %0 {offsets = [5, 0], sizes = [1, 128], strides = [1, 1]} : vector<9x128xf32> to vector<1x128xf32>
    %29 = vector.shape_cast %28 : vector<1x128xf32> to vector<128xf32>
    %30 = vector.shape_cast %29 : vector<128xf32> to vector<1x1x1x128xf32>
    %31 = vector.broadcast %30 : vector<1x1x1x128xf32> to vector<2x8x8x128xf32>
    %32 = arith.mulf %16, %31 : vector<2x8x8x128xf32>
    %33 = arith.addf %27, %32 : vector<2x8x8x128xf32>
    %c0_7 = arith.constant 0 : index
    %c0_8 = arith.constant 0 : index
    %c0_9 = arith.constant 0 : index
    %c0_10 = arith.constant 0 : index
    %34 = vector.load %arg6[%c0_7, %c0_8, %c0_9, %c0_10] : memref<2x8x8x128xf32, #tpu.memory_space<vmem>>, vector<2x8x8x128xf32>
    tpu.vector_store %arg6[%c0_7, %c0_8, %c0_9, %c0_10], %33 {strides = array<i32>} : memref<2x8x8x128xf32, #tpu.memory_space<vmem>>, vector<2x8x8x128xf32>,
    %c0_11 = arith.constant 0 : index
    %c1 = arith.constant 1 : index
    %c0_12 = arith.constant 0 : index
    %c0_13 = arith.constant 0 : index
    %35 = vector.load %arg6[%c0_11, %c1, %c0_12, %c0_13] : memref<2x8x8x128xf32, #tpu.memory_space<vmem>>, vector<2x7x8x128xf32>
    %c0_14 = arith.constant 0 : index
    %c0_15 = arith.constant 0 : index
    %c0_16 = arith.constant 0 : index
    %c0_17 = arith.constant 0 : index
    %36 = vector.load %arg1[%c0_14, %c0_15, %c0_16, %c0_17] : memref<2x8x8x128xf32, #tpu.memory_space<vmem>>, vector<2x7x8x128xf32>
    %c1_i32_18 = arith.constant 1 : i32
    %37 = tpu.dynamic_rotate %36 by %c1_i32_18 dim 2 : vector<2x7x8x128xf32>, i32 -> vector<2x7x8x128xf32>
    %cst_19 = arith.constant 0.000000e+00 : f32
    %38 = vector.shape_cast %3 : vector<1x1x8x128xi1> to vector<1x1x8x128xi1>
    %39 = vector.broadcast %38 : vector<1x1x8x128xi1> to vector<2x7x8x128xi1>
    %40 = vector.broadcast %cst_19 : f32 to vector<2x7x8x128xf32>
    %41 = arith.select %39, %37, %40 : vector<2x7x8x128xi1>, vector<2x7x8x128xf32>
    %c7_i32_20 = arith.constant 7 : i32
    %42 = tpu.dynamic_rotate %36 by %c7_i32_20 dim 2 : vector<2x7x8x128xf32>, i32 -> vector<2x7x8x128xf32>
    %cst_21 = arith.constant 0.000000e+00 : f32
    %43 = vector.shape_cast %5 : vector<1x1x8x128xi1> to vector<1x1x8x128xi1>
    %44 = vector.broadcast %43 : vector<1x1x8x128xi1> to vector<2x7x8x128xi1>
    %45 = vector.broadcast %cst_21 : f32 to vector<2x7x8x128xf32>
    %46 = arith.select %44, %42, %45 : vector<2x7x8x128xi1>, vector<2x7x8x128xf32>
    %47 = vector.extract_strided_slice %0 {offsets = [0, 0], sizes = [1, 128], strides = [1, 1]} : vector<9x128xf32> to vector<1x128xf32>
    %48 = vector.shape_cast %47 : vector<1x128xf32> to vector<128xf32>
    %49 = vector.shape_cast %48 : vector<128xf32> to vector<1x1x1x128xf32>
    %50 = vector.broadcast %49 : vector<1x1x1x128xf32> to vector<2x7x8x128xf32>
    %51 = arith.mulf %41, %50 : vector<2x7x8x128xf32>
    %52 = vector.extract_strided_slice %0 {offsets = [1, 0], sizes = [1, 128], strides = [1, 1]} : vector<9x128xf32> to vector<1x128xf32>
    %53 = vector.shape_cast %52 : vector<1x128xf32> to vector<128xf32>
    %54 = vector.shape_cast %53 : vector<128xf32> to vector<1x1x1x128xf32>
    %55 = vector.broadcast %54 : vector<1x1x1x128xf32> to vector<2x7x8x128xf32>
    %56 = arith.mulf %36, %55 : vector<2x7x8x128xf32>
    %57 = arith.addf %51, %56 : vector<2x7x8x128xf32>
    %58 = vector.extract_strided_slice %0 {offsets = [2, 0], sizes = [1, 128], strides = [1, 1]} : vector<9x128xf32> to vector<1x128xf32>
    %59 = vector.shape_cast %58 : vector<1x128xf32> to vector<128xf32>
    %60 = vector.shape_cast %59 : vector<128xf32> to vector<1x1x1x128xf32>
    %61 = vector.broadcast %60 : vector<1x1x1x128xf32> to vector<2x7x8x128xf32>
    %62 = arith.mulf %46, %61 : vector<2x7x8x128xf32>
    %63 = arith.addf %57, %62 : vector<2x7x8x128xf32>
    %64 = arith.addf %35, %63 : vector<2x7x8x128xf32>
    %c0_22 = arith.constant 0 : index
    %c1_23 = arith.constant 1 : index
    %c0_24 = arith.constant 0 : index
    %c0_25 = arith.constant 0 : index
    %65 = vector.load %arg6[%c0_22, %c1_23, %c0_24, %c0_25] : memref<2x8x8x128xf32, #tpu.memory_space<vmem>>, vector<2x7x8x128xf32>
    tpu.vector_store %arg6[%c0_22, %c1_23, %c0_24, %c0_25], %64 {strides = array<i32>} : memref<2x8x8x128xf32, #tpu.memory_space<vmem>>, vector<2x7x8x128xf32>,
    %c0_26 = arith.constant 0 : index
    %c0_27 = arith.constant 0 : index
    %c0_28 = arith.constant 0 : index
    %c0_29 = arith.constant 0 : index
    %66 = vector.load %arg6[%c0_26, %c0_27, %c0_28, %c0_29] : memref<2x8x8x128xf32, #tpu.memory_space<vmem>>, vector<2x7x8x128xf32>
    %c0_30 = arith.constant 0 : index
    %c1_31 = arith.constant 1 : index
    %c0_32 = arith.constant 0 : index
    %c0_33 = arith.constant 0 : index
    %67 = vector.load %arg1[%c0_30, %c1_31, %c0_32, %c0_33] : memref<2x8x8x128xf32, #tpu.memory_space<vmem>>, vector<2x7x8x128xf32>
    %c1_i32_34 = arith.constant 1 : i32
    %68 = tpu.dynamic_rotate %67 by %c1_i32_34 dim 2 : vector<2x7x8x128xf32>, i32 -> vector<2x7x8x128xf32>
    %cst_35 = arith.constant 0.000000e+00 : f32
    %69 = vector.shape_cast %3 : vector<1x1x8x128xi1> to vector<1x1x8x128xi1>
    %70 = vector.broadcast %69 : vector<1x1x8x128xi1> to vector<2x7x8x128xi1>
    %71 = vector.broadcast %cst_35 : f32 to vector<2x7x8x128xf32>
    %72 = arith.select %70, %68, %71 : vector<2x7x8x128xi1>, vector<2x7x8x128xf32>
    %c7_i32_36 = arith.constant 7 : i32
    %73 = tpu.dynamic_rotate %67 by %c7_i32_36 dim 2 : vector<2x7x8x128xf32>, i32 -> vector<2x7x8x128xf32>
    %cst_37 = arith.constant 0.000000e+00 : f32
    %74 = vector.shape_cast %5 : vector<1x1x8x128xi1> to vector<1x1x8x128xi1>
    %75 = vector.broadcast %74 : vector<1x1x8x128xi1> to vector<2x7x8x128xi1>
    %76 = vector.broadcast %cst_37 : f32 to vector<2x7x8x128xf32>
    %77 = arith.select %75, %73, %76 : vector<2x7x8x128xi1>, vector<2x7x8x128xf32>
    %78 = vector.extract_strided_slice %0 {offsets = [6, 0], sizes = [1, 128], strides = [1, 1]} : vector<9x128xf32> to vector<1x128xf32>
    %79 = vector.shape_cast %78 : vector<1x128xf32> to vector<128xf32>
    %80 = vector.shape_cast %79 : vector<128xf32> to vector<1x1x1x128xf32>
    %81 = vector.broadcast %80 : vector<1x1x1x128xf32> to vector<2x7x8x128xf32>
    %82 = arith.mulf %72, %81 : vector<2x7x8x128xf32>
    %83 = vector.extract_strided_slice %0 {offsets = [7, 0], sizes = [1, 128], strides = [1, 1]} : vector<9x128xf32> to vector<1x128xf32>
    %84 = vector.shape_cast %83 : vector<1x128xf32> to vector<128xf32>
    %85 = vector.shape_cast %84 : vector<128xf32> to vector<1x1x1x128xf32>
    %86 = vector.broadcast %85 : vector<1x1x1x128xf32> to vector<2x7x8x128xf32>
    %87 = arith.mulf %67, %86 : vector<2x7x8x128xf32>
    %88 = arith.addf %82, %87 : vector<2x7x8x128xf32>
    %89 = vector.extract_strided_slice %0 {offsets = [8, 0], sizes = [1, 128], strides = [1, 1]} : vector<9x128xf32> to vector<1x128xf32>
    %90 = vector.shape_cast %89 : vector<1x128xf32> to vector<128xf32>
    %91 = vector.shape_cast %90 : vector<128xf32> to vector<1x1x1x128xf32>
    %92 = vector.broadcast %91 : vector<1x1x1x128xf32> to vector<2x7x8x128xf32>
    %93 = arith.mulf %77, %92 : vector<2x7x8x128xf32>
    %94 = arith.addf %88, %93 : vector<2x7x8x128xf32>
    %95 = arith.addf %66, %94 : vector<2x7x8x128xf32>
    %c0_38 = arith.constant 0 : index
    %c0_39 = arith.constant 0 : index
    %c0_40 = arith.constant 0 : index
    %c0_41 = arith.constant 0 : index
    %96 = vector.load %arg6[%c0_38, %c0_39, %c0_40, %c0_41] : memref<2x8x8x128xf32, #tpu.memory_space<vmem>>, vector<2x7x8x128xf32>
    tpu.vector_store %arg6[%c0_38, %c0_39, %c0_40, %c0_41], %95 {strides = array<i32>} : memref<2x8x8x128xf32, #tpu.memory_space<vmem>>, vector<2x7x8x128xf32>,
    %c0_42 = arith.constant 0 : index
    %c0_43 = arith.constant 0 : index
    %c0_44 = arith.constant 0 : index
    %c0_45 = arith.constant 0 : index
    %97 = vector.load %arg6[%c0_42, %c0_43, %c0_44, %c0_45] : memref<2x8x8x128xf32, #tpu.memory_space<vmem>>, vector<2x8x8x128xf32>
    %cst_46 = arith.constant dense<0.000000e+00> : vector<128xf32>
    %98 = vector.multi_reduction <add>, %97, %cst_46 [0, 1, 2] : vector<2x8x8x128xf32> to vector<128xf32>
    %99 = vector.shape_cast %98 : vector<128xf32> to vector<1x1x1x128xf32>
    %100 = arith.mulf %97, %97 : vector<2x8x8x128xf32>
    %cst_47 = arith.constant dense<0.000000e+00> : vector<128xf32>
    %101 = vector.multi_reduction <add>, %100, %cst_47 [0, 1, 2] : vector<2x8x8x128xf32> to vector<128xf32>
    %102 = vector.shape_cast %101 : vector<128xf32> to vector<1x1x1x128xf32>
    %cst_48 = arith.constant 7.812500e-03 : f32
    %103 = vector.broadcast %cst_48 : f32 to vector<1x1x1x128xf32>
    %104 = arith.mulf %99, %103 : vector<1x1x1x128xf32>
    %cst_49 = arith.constant 7.812500e-03 : f32
    %105 = vector.broadcast %cst_49 : f32 to vector<1x1x1x128xf32>
    %106 = arith.mulf %102, %105 : vector<1x1x1x128xf32>
    %107 = arith.mulf %104, %104 : vector<1x1x1x128xf32>
    %108 = arith.subf %106, %107 : vector<1x1x1x128xf32>
    %cst_50 = arith.constant 0.000000e+00 : f32
    %109 = vector.broadcast %cst_50 : f32 to vector<1x1x1x128xf32>
    %110 = arith.maximumf %108, %109 : vector<1x1x1x128xf32>
    %c0_51 = arith.constant 0 : index
    %c0_52 = arith.constant 0 : index
    %111 = vector.load %arg3[%c0_51, %c0_52] : memref<1x128xf32, #tpu.memory_space<vmem>>, vector<1x128xf32>
    %112 = vector.shape_cast %111 : vector<1x128xf32> to vector<128xf32>
    %113 = vector.shape_cast %112 : vector<128xf32> to vector<1x1x1x128xf32>
    %cst_53 = arith.constant 9.99999974E-6 : f32
    %114 = vector.broadcast %cst_53 : f32 to vector<1x1x1x128xf32>
    %115 = arith.addf %110, %114 : vector<1x1x1x128xf32>
    %116 = math.rsqrt %115 : vector<1x1x1x128xf32>
    %117 = arith.mulf %113, %116 : vector<1x1x1x128xf32>
    %c0_54 = arith.constant 0 : index
    %c0_55 = arith.constant 0 : index
    %118 = vector.load %arg4[%c0_54, %c0_55] : memref<1x128xf32, #tpu.memory_space<vmem>>, vector<1x128xf32>
    %119 = vector.shape_cast %118 : vector<1x128xf32> to vector<128xf32>
    %120 = vector.shape_cast %119 : vector<128xf32> to vector<1x1x1x128xf32>
    %121 = arith.mulf %104, %117 : vector<1x1x1x128xf32>
    %122 = arith.subf %120, %121 : vector<1x1x1x128xf32>
    %123 = vector.broadcast %117 : vector<1x1x1x128xf32> to vector<2x8x8x128xf32>
    %124 = arith.mulf %97, %123 : vector<2x8x8x128xf32>
    %125 = vector.broadcast %122 : vector<1x1x1x128xf32> to vector<2x8x8x128xf32>
    %126 = arith.addf %124, %125 : vector<2x8x8x128xf32>
    %cst_56 = arith.constant 0.000000e+00 : f32
    %127 = vector.broadcast %cst_56 : f32 to vector<2x8x8x128xf32>
    %128 = arith.maximumf %126, %127 : vector<2x8x8x128xf32>
    %c0_57 = arith.constant 0 : index
    %c0_58 = arith.constant 0 : index
    %c0_59 = arith.constant 0 : index
    %c0_60 = arith.constant 0 : index
    %129 = vector.load %arg5[%c0_57, %c0_58, %c0_59, %c0_60] : memref<2x8x8x128xf32, #tpu.memory_space<vmem>>, vector<2x8x8x128xf32>
    tpu.vector_store %arg5[%c0_57, %c0_58, %c0_59, %c0_60], %128 {strides = array<i32>} : memref<2x8x8x128xf32, #tpu.memory_space<vmem>>, vector<2x8x8x128xf32>,
    return
  }
  func.func @transform_0(%arg0: i32) -> (i32, i32, i32, i32) {
    %c0_i32 = arith.constant 0 : i32
    %c0_i32_0 = arith.constant 0 : i32
    %c0_i32_1 = arith.constant 0 : i32
    %c0_i32_2 = arith.constant 0 : i32
    return %c0_i32, %c0_i32_0, %c0_i32_1, %arg0 : i32, i32, i32, i32
  }
  func.func @transform_1(%arg0: i32) -> (i32, i32) {
    %c0_i32 = arith.constant 0 : i32
    %c0_i32_0 = arith.constant 0 : i32
    return %c0_i32, %arg0 : i32, i32
  }
  func.func @transform_2(%arg0: i32) -> (i32, i32) {
    %c0_i32 = arith.constant 0 : i32
    %c0_i32_0 = arith.constant 0 : i32
    return %c0_i32, %arg0 : i32, i32
  }
  func.func @transform_3(%arg0: i32) -> (i32, i32) {
    %c0_i32 = arith.constant 0 : i32
    %c0_i32_0 = arith.constant 0 : i32
    return %c0_i32, %arg0 : i32, i32
  }
  func.func @transform_4(%arg0: i32) -> (i32, i32, i32, i32) {
    %c0_i32 = arith.constant 0 : i32
    %c0_i32_0 = arith.constant 0 : i32
    %c0_i32_1 = arith.constant 0 : i32
    %c0_i32_2 = arith.constant 0 : i32
    return %c0_i32, %c0_i32_0, %c0_i32_1, %arg0 : i32, i32, i32, i32
  }
}

</mosaic_0001>

<bundles_post_ra>
// kernel: tpu_custom_call.1
= control target key start
LH: loop header
LB: loop body
LE: loop exit
PB: predicated region body
PF: predicated region fallthrough
CT: control target
= control target key end

     0   :  { %s2303_s0 = inlined_call_operand.hbm [shape: f32[2,8,8,256], index: 0, kind: input, shape index: {}]   ;;  %s2304_s1 = inlined_call_operand.hbm [shape: f32[9,256], index: 1, kind: input, shape index: {}]   ;;  %s2305_s2 = inlined_call_operand.hbm [shape: f32[1,256], index: 2, kind: input, shape index: {}]   ;;  %s2306_s3 = inlined_call_operand.vmem [shape: f32[1,256], index: 3, kind: input, shape index: {}]   ;;  %s2307_s4 = inlined_call_operand.hbm [shape: f32[2,8,8,256], index: 4, kind: output, shape index: {}]  }
   0x1   :  { %2378 = sst [smem:[#allocation72_spill]] %s2303_s0 }
   0x2   :  { %2379 = sst [smem:[#allocation73_spill]] %s2304_s1 }
   0x3   :  { %9 = vsyncpa [#allocation4], 0 }
   0x4   :  { %11 = vsyncpa [#allocation4 + $0x1], 0 }
   0x5   :  { %12 = vsyncpa [#allocation7], 0 }
   0x6   :  { %14 = vsyncpa [#allocation7 + $0x1], 0 }
   0x7   :  { %15 = vsyncpa [#allocation5], 0 }
   0x8   :  { %17 = vsyncpa [#allocation5 + $0x1], 0  ;;  %s1453_s15 = smov 0   ;;  %s1455_s16 = smov 0  }
   0x9   :  { %s1457_s17 = smov 0   ;;  %s1459_s18 = smov 0  }
   0xa LB: > { %2380 = sst [smem:[#allocation13_spill]] %s1416_s17  ;;  %s1474_s19 = sadd.s32 4294967295, %s1420_s18   ;;  %s1420_s18 = sphi %s1459_s18, %s2533_s18   ;;  %s1416_s17 = sphi %s1457_s17, %s2530_s17   ;;  %s1412_s16 = sphi %s1455_s16, %s2532_s16   ;;  %s1408_s15 = sphi %s1453_s15, %s2531_s15  }
   0xb   : > { %s1166_s20 = sadd.s32 4294967294, %s1420_s18   ;;  %s1478_s21 = sadd.s32 1, %s1420_s18  }
   0xc   : > { %s30_s22 = sadd.s32 1, %s1416_s17  ;;  %s27_s23 = ssub.s32 %s1420_s18, %s1478_s21 }
   0xd   : > { %p37_p0 = scmp.ne.s32.totalorder %s1416_s17, %s1412_s16  ;;  %p28_p1 = scmp.eq.s32.totalorder %s27_s23, 0 }
   0xe   : > { %p38_p2 = scmp.eq.s32.totalorder %s1420_s18, 0  ;;  %p43_p3 = scmp.ne.s32.totalorder %s1412_s16, %s1408_s15 }
   0xf   : > { %p44_p4 = scmp.eq.s32.totalorder %s1474_s19, 0  ;;  %p145_p7 = scmp.eq.s32.totalorder %s1474_s19, 1 }
  0x10   : > { %s1490_s24 = scalar_select %p28_p1, %s1416_s17, %s30_s22  }
  0x11   : > { %p39_p5 = por %p38_p2, %p37_p0  ;;  %p1492_p6 = por %p44_p4, %p43_p3 }
  0x12   : > { %2381 = sst [smem:[#allocation14_spill]] %s1490_s24  ;;  %p151_p8 = scmp.eq.s32.totalorder %s1166_s20, 1 }
  0x13   : > { %p1168_p9 = scmp.ge.s32.totalorder %s1420_s18, 2  ;;  %p1217_p10 = scmp.lt.s32.totalorder %s1420_s18, 2 }
  0x14   : > { %p1499_p11 = por %p145_p7, %p37_p0  ;;  %p1503_p12 = por %p151_p8, %p43_p3 }
  0x15   : > { %s1508_s28 = sand.u32 1, %s1416_s17   ;;  %s1170_s29 = sshll.u32 %s1420_s18, 3 }
  0x16   : > { %p1511_p13 = pnand %p1217_p10, %p39_p5  ;;  %s192_s5 = sand.u32 1, %s1420_s18  }
  0x17   : > { %s1171_s6 = sshll.u32 %s1508_s28, 4  ;;  %s2386_s1 = sld [smem:[#allocation73_spill]] }
  0x18   : > { %s196_s11 = scalar_lea.vmem [#allocation6], %s1171_s6  ;;  %s1522_s13 = scalar_lea.sflag [#allocation7], %s192_s5 }
  0x19   : > { %s203_s12 = sshll.u32 %s196_s11, 4  ;;  %p1264_p1 = pneg %p1511_p13  ;;  %s204_s12 = int_to_ptr.vmem [resolvable:$true] %s203_s12 }
  0x1d   : > { %s200_s9 = scalar_lea.hbm %s2386_s1, %s1170_s29  ;;  %s1267_s7 = scalar_lea.hbm %s2386_s1, 32 }
  0x1e   : > { %s201_s10 = sshll.u32 %s200_s9, 4  ;;  %s202_s10 = int_to_ptr.hbm [resolvable:$true] %s201_s10 }
  0x1f   : > { %s1260_s14 = sshra.s32 %s202_s10, 4  ;;  %s1261_s14 = int_to_ptr.hbm [resolvable:$true] %s1260_s14 }
  0x20   : > { %s1262_s20 = scalar_lea.hbm %s1261_s14, 16  ;;  %p1268_p4 = scmp.lt.s32.totalorder %s1261_s14, %s2386_s1 }
  0x21   : > { %p1263_p0 = scmp.ne.s32.totalorder %s1261_s14, %s1262_s20  ;;  %p1269_p5 = scmp.lt.s32.totalorder %s1267_s7, %s1262_s20 }
  0x23   : > { %p1265_p2 = pnand %p1264_p1, %p1263_p0  ;;  %p1270_p7 = por %p1269_p5, %p1268_p4 }
  0x25   : > { %p1266_p3 = pneg %p1265_p2 }
  0x27   : > { %p1271_p8 = pnand %p1270_p7, %p1266_p3 }
  0x29   : > { %1274 = shalt.err (!%p1271_p8)
}
  0x2a   : > { %s2308_s5 = smov 256   ;;  %s2309_s9 = smov 128  }
  0x2b   : > { %s2310_s11 = smov 8   ;;  %p1173_p10 = scmp.ge.s32.totalorder %s1420_s18, 1 }
  0x2c   : > { %1209 = dma.hbm_to_vmem [thread:$0]  (!%p1511_p13), %s202_s10, 256, %s204_s12, %s1522_s13, %s2308_s5, %s2309_s9, %s2310_s11  }
  0x2d   : > { %p234_p0 = scmp.lt.s32.totalorder %s1420_s18, 3  ;;  %s1169_s14 = sshll.u32 %s1508_s28, 7 }
  0x2e   : > { %s2388_s0 = sld [smem:[#allocation72_spill]]  ;;  %s175_s6 = scalar_lea.vmem [#allocation3], %s1169_s14 }
  0x2f   : > { %p1544_p2 = pnand %p1173_p10, %p234_p0  ;;  %s182_s8 = sshll.u32 %s175_s6, 4  ;;  %s183_s8 = int_to_ptr.vmem [resolvable:$true] %s182_s8 }
  0x30   : > { %s172_s24 = scalar_lea.sflag [#allocation4], %s1508_s28 }
  0x34   : > { %s179_s7 = scalar_lea.hbm %s2388_s0, %s1170_s29  ;;  %s1297_s11 = scalar_lea.hbm %s2388_s0, 256 }
  0x35   : > { %s180_s1 = sshll.u32 %s179_s7, 4  ;;  %s181_s1 = int_to_ptr.hbm [resolvable:$true] %s180_s1 }
  0x36   : > { %s1290_s10 = sshra.s32 %s181_s1, 4  ;;  %s1291_s10 = int_to_ptr.hbm [resolvable:$true] %s1290_s10 }
  0x37   : > { %s1292_s12 = scalar_lea.hbm %s1291_s10, 128  ;;  %p1298_p7 = scmp.lt.s32.totalorder %s1291_s10, %s2388_s0 }
  0x38   : > { %p1293_p3 = scmp.ne.s32.totalorder %s1291_s10, %s1292_s12  ;;  %p1299_p8 = scmp.lt.s32.totalorder %s1297_s11, %s1292_s12 }
  0x3a   : > { %p1295_p4 = pnand %p1293_p3, %p1264_p1  ;;  %p1300_p10 = por %p1299_p8, %p1298_p7 }
  0x3c   : > { %p1296_p5 = pneg %p1295_p4 }
  0x3e   : > { %p1301_p0 = pnand %p1300_p10, %p1296_p5 }
  0x40   : > { %1304 = shalt.err (!%p1301_p0)
}
  0x41   : > { %s2389_s14 = smov 8   ;;  %s2390_s23 = smov 128  }
  0x42   : > { %s2391_s7 = smov 256   ;;  %s219_s9 = scalar_lea.hbm %s2305_s2, %s1420_s18 }
  0x43   : > { %1206 = dma.hbm_to_vmem [thread:$0]  (!%p1511_p13), %s181_s1, 2048, %s183_s8, %s172_s24, %s2391_s7, %s2390_s23, %s2389_s14  }
  0x44   : > { %s216_s17 = scalar_lea.vmem [#allocation8], %s1508_s28  ;;  %s221_s10 = sshll.u32 %s219_s9, 4  ;;  %s222_s10 = int_to_ptr.hbm [resolvable:$true] %s221_s10 }
  0x45   : > { %s223_s22 = sshll.u32 %s216_s17, 4  ;;  %s1320_s11 = sshra.s32 %s222_s10, 4  ;;  %s224_s22 = int_to_ptr.vmem [resolvable:$true] %s223_s22  ;;  %s1321_s11 = int_to_ptr.hbm [resolvable:$true] %s1320_s11 }
  0x46   : > { %s1322_s12 = scalar_lea.hbm %s1321_s11, 1  ;;  %s1327_s1 = scalar_lea.hbm %s2305_s2, 2 }
  0x47   : > { %p1323_p3 = scmp.ne.s32.totalorder %s1321_s11, %s1322_s12  ;;  %p1328_p7 = scmp.lt.s32.totalorder %s1321_s11, %s2305_s2 }
  0x48   : > { %p1329_p8 = scmp.lt.s32.totalorder %s1327_s1, %s1322_s12 }
  0x49   : > { %p1325_p4 = pnand %p1323_p3, %p1264_p1 }
  0x4a   : > { %p1330_p10 = por %p1329_p8, %p1328_p7 }
  0x4b   : > { %p1326_p5 = pneg %p1325_p4 }
  0x4d   : > { %p1331_p0 = pnand %p1330_p10, %p1326_p5 }
  0x4f   : > { %1334 = shalt.err (!%p1331_p0)
}
  0x50   : > { %1212 = dma.hbm_to_vmem [thread:$0]  (!%p1511_p13), %s222_s10, 16, %s224_s22, %s1522_s13  }
  0x51   : > { %238 = sbr.rel (%p1544_p2) target bundleno = 276 (0x114), region = 36 }
  0x56   : > { %s1588_s17 = sand.u32 1, %s1412_s16  }
  0x57   : > { %s1174_s0 = sshll.u32 %s1588_s17, 7  ;;  %s241_s28 = scalar_lea.sflag [#allocation4], %s1588_s17 }
  0x58   : > { %s1594_s14 = scalar_lea.vmem [#allocation3], %s1174_s0 }
  0x59   : > { %1395 = dma.done.wait (%p1492_p6), %s241_s28, 2048  }
  0x5a   : > { %1397 = vsyncadd (%p1492_p6), %s241_s28, 4294965248  ;;  %s250_s30 = sand.u32 1, %s1474_s19   ;;  %s1175_s13 = sshll.u32 %s1588_s17, 4 }
  0x5b   : > { %s251_s20 = scalar_lea.sflag [#allocation7], %s250_s30  ;;  %s1602_s23 = scalar_lea.vmem [#allocation6], %s1175_s13 }
  0x5c   : > { %1399 = dma.done.wait (%p1492_p6), %s251_s20, 272  }
  0x5d   : > { %1401 = vsyncadd (%p1492_p6), %s251_s20, 4294967024  ;;  %v306_v0 = vlaneseq  ;;  %v1611_v2 = vld [vmem:[%s1602_s23] sm:$0xff]  ;;  %v1617_v4 = vld [vmem:[%s1594_s14 + $0x8] sm:$0xff]  ;;  %p301_p6 = scmp.lt.s32.totalorder %s1474_s19, 1  ;;  %s263_s7 = scalar_lea.vmem [#allocation8], %s1588_s17 }
  0x5e   : > { %2392 = vst [vmem:[#allocation15_spill] sm:$0xff] %v1611_v2  ;;  %v1614_v3 = vld [vmem:[%s1594_s14] sm:$0xff]  ;;  %v1620_v5 = vld [vmem:[%s1594_s14 + $0x10] sm:$0xff]  ;;  %v1623_v6 = vld [vmem:[%s1594_s14 + $0x18] sm:$0xff]  ;;  %v327_v18 = vrot.slane %v1617_v4, 7  ;;  %v1660_v20 = vperm.slane %v1611_v2, 3 }
  0x5f   : > { %v1608_v1 = vshrl.u32 %v306_v0, 7  ;;  %2393 = vst [vmem:[#allocation16_spill] sm:$0xff] %v1614_v3  ;;  %v1626_v7 = vld [vmem:[%s1594_s14 + $0x20] sm:$0xff]  ;;  %v1629_v8 = vld [vmem:[%s1594_s14 + $0x28] sm:$0xff]  ;;  %v1632_v9 = vld [vmem:[%s1594_s14 + $0x30] sm:$0xff]  ;;  %v326_v14 = vrot.slane %v1614_v3, 7 }
  0x60   : > { %2394 = vst [vmem:[#allocation17_spill] sm:$0xff] %v1617_v4  ;;  %v1635_v10 = vld [vmem:[%s1594_s14 + $0x38] sm:$0xff]  ;;  %v1639_v11 = vld [vmem:[%s1594_s14 + $0x40] sm:$0xff]  ;;  %v1642_v12 = vld [vmem:[%s1594_s14 + $0x48] sm:$0xff]  ;;  %v360_v19 = vrot.slane %v1614_v3, 1  ;;  %v328_v23 = vrot.slane %v1620_v5, 7 }
  0x61   : > { %2395 = vst [vmem:[#allocation18_spill] sm:$0xff] %v1620_v5  ;;  %vm308_vm0 = vcmp.gt.s32.totalorder %v1608_v1, 0  ;;  %v1645_v13 = vld [vmem:[%s1594_s14 + $0x50] sm:$0xff]  ;;  %v1649_v15 = vld [vmem:[%s1594_s14 + $0x58] sm:$0xff]  ;;  %v1652_v16 = vld [vmem:[%s1594_s14 + $0x60] sm:$0xff]  ;;  %vm309_vm1 = vcmp.lt.s32.totalorder %v1608_v1, 7 }
  0x62   : > { %2396 = vst [vmem:[#allocation19_spill] sm:$0xff] %v1623_v6  ;;  %v1655_v17 = vld [vmem:[%s1594_s14 + $0x68] sm:$0xff]  ;;  %v1664_v21 = vld [vmem:[%s1594_s14 + $0x70] sm:$0xff]  ;;  %v1667_v22 = vld [vmem:[%s1594_s14 + $0x78] sm:$0xff]  ;;  %v329_v24 = vrot.slane %v1623_v6, 7  ;;  %v330_v25 = vrot.slane %v1626_v7, 7 }
  0x63   : > { %2397 = vst [vmem:[#allocation20_spill] sm:$0xff] %v1626_v7  ;;  %v331_v26 = vrot.slane %v1629_v8, 7  ;;  %v332_v27 = vrot.slane %v1632_v9, 7  ;;  %v333_v28 = vrot.slane %v1635_v10, 7  ;;  %v334_v29 = vrot.slane %v1639_v11, 7  ;;  %s302_s25 = scalar_select %p301_p6, %s1474_s19, 1 }
  0x64   : > { %2398 = vst [vmem:[#allocation21_spill] sm:$0xff] %v1629_v8  ;;  %v335_v30 = vrot.slane %v1642_v12, 7  ;;  %v336_v31 = vrot.slane %v1645_v13, 7  ;;  %v337_v32 = vrot.slane %v1649_v15, 7  ;;  %v338_v33 = vrot.slane %v1652_v16, 7  ;;  %s2247_s22 = scalar_lea.vmem [#allocation9], %s1174_s0 }
  0x65   : > { %2399 = vst [vmem:[#allocation22_spill] sm:$0xff] %v1632_v9  ;;  %v339_v34 = vrot.slane %v1655_v17, 7  ;;  %v340_v35 = vrot.slane %v1664_v21, 7  ;;  %v341_v36 = vrot.slane %v1667_v22, 7  ;;  %v1685_v37 = vsel %vm308_vm0, %v326_v14, 0.0  ;;  %s303_s9 = scalar_lea.vmem %s2306_s3, %s302_s25  ;;  %s1192_s10 = sshll.u32 %s1474_s19, 3 }
  0x66   : > { %2400 = vst [vmem:[#allocation23_spill] sm:$0xff] %v1635_v10  ;;  %v1689_v38 = vsel %vm308_vm0, %v327_v18, 0.0  ;;  %v1693_v39 = vsel %vm308_vm0, %v328_v23, 0.0  ;;  %v1697_v40 = vsel %vm308_vm0, %v329_v24, 0.0  ;;  %v1701_v41 = vsel %vm308_vm0, %v330_v25, 0.0  ;;  %s1041_s29 = scalar_lea.hbm %s2307_s4, %s1192_s10  ;;  %s1042_s19 = sshll.u32 %s2247_s22, 4  ;;  %s1043_s19 = int_to_ptr.vmem [resolvable:$true] %s1042_s19 }
  0x67   : > { %2401 = vst [vmem:[#allocation24_spill] sm:$0xff] %v1639_v11  ;;  %v1705_v42 = vsel %vm308_vm0, %v331_v26, 0.0  ;;  %v1709_v43 = vsel %vm308_vm0, %v332_v27, 0.0  ;;  %v1713_v44 = vsel %vm308_vm0, %v333_v28, 0.0  ;;  %v1717_v45 = vsel %vm308_vm0, %v334_v29, 0.0  ;;  %s1044_s1 = sshll.u32 %s1041_s29, 4  ;;  %s1045_s1 = int_to_ptr.hbm [resolvable:$true] %s1044_s1 }
  0x68   : > { %2402 = vst [vmem:[#allocation25_spill] sm:$0xff] %v1642_v12  ;;  %v1721_v46 = vsel %vm308_vm0, %v335_v30, 0.0  ;;  %v1725_v47 = vsel %vm308_vm0, %v336_v31, 0.0  ;;  %v1729_v48 = vsel %vm308_vm0, %v337_v32, 0.0  ;;  %v1733_v49 = vsel %vm308_vm0, %v338_v33, 0.0  ;;  %s1031_s24 = scalar_lea.sflag [#allocation5], %s1588_s17 }
  0x69   : > { %2403 = vst [vmem:[#allocation26_spill] sm:$0xff] %v1645_v13  ;;  %v1737_v50 = vsel %vm308_vm0, %v339_v34, 0.0  ;;  %v1741_v51 = vsel %vm308_vm0, %v340_v35, 0.0  ;;  %v1745_v52 = vsel %vm308_vm0, %v341_v36, 0.0  ;;  %v361_v53 = vrot.slane %v1617_v4, 1  ;;  %s1364_s8 = sshra.s32 %s1045_s1, 4  ;;  %s1365_s8 = int_to_ptr.hbm [resolvable:$true] %s1364_s8 }
  0x6a   : > { %2404 = vst [vmem:[#allocation27_spill] sm:$0xff] %v1649_v15  ;;  %v362_v54 = vrot.slane %v1620_v5, 1  ;;  %v363_v55 = vrot.slane %v1623_v6, 1  ;;  %v364_v56 = vrot.slane %v1626_v7, 1  ;;  %v365_v57 = vrot.slane %v1629_v8, 1  ;;  %s1366_s0 = scalar_lea.hbm %s1365_s8, 128  ;;  %p1371_p3 = scmp.lt.s32.totalorder %s1365_s8, %s2307_s4 }
  0x6b   : > { %2405 = vst [vmem:[#allocation28_spill] sm:$0xff] %v1652_v16  ;;  %v366_v58 = vrot.slane %v1632_v9, 1  ;;  %v367_v59 = vrot.slane %v1635_v10, 1  ;;  %v368_v60 = vrot.slane %v1639_v11, 1  ;;  %v369_v61 = vrot.slane %v1642_v12, 1  ;;  %p1367_p13 = scmp.ne.s32.totalorder %s1365_s8, %s1366_s0  ;;  %s1370_s30 = scalar_lea.hbm %s2307_s4, 256 }
  0x6c   : > { %2406 = vst [vmem:[#allocation29_spill] sm:$0xff] %v1655_v17  ;;  %v370_v62 = vrot.slane %v1645_v13, 1  ;;  %v371_v63 = vrot.slane %v1649_v15, 1  ;;  %v372_v0 = vrot.slane %v1652_v16, 1  ;;  %v373_v14 = vrot.slane %v1655_v17, 1  ;;  %p1372_p4 = scmp.lt.s32.totalorder %s1370_s30, %s1366_s0 }
  0x6d   : > { %2407 = vst [vmem:[#allocation30_spill] sm:$0xff] %v1664_v21  ;;  %v374_v18 = vrot.slane %v1664_v21, 1  ;;  %v375_v23 = vrot.slane %v1667_v22, 1  ;;  %v1764_v24 = vsel %vm309_vm1, %v360_v19, 0.0  ;;  %v1768_v25 = vsel %vm309_vm1, %v361_v53, 0.0  ;;  %p1368_p1 = pnand %p1367_p13, %p1499_p11 }
  0x6e   : > { %2408 = vst [vmem:[#allocation31_spill] sm:$0xff] %v1667_v22  ;;  %v1772_v26 = vsel %vm309_vm1, %v362_v54, 0.0  ;;  %v1776_v27 = vsel %vm309_vm1, %v363_v55, 0.0  ;;  %v1780_v28 = vsel %vm309_vm1, %v364_v56, 0.0  ;;  %v1784_v19 = vsel %vm309_vm1, %v365_v57, 0.0  ;;  %p1373_p5 = por %p1372_p4, %p1371_p3 }
  0x6f   : > { %2409 = vst [vmem:[#allocation32_spill] sm:$0xff] %v1685_v37  ;;  %v1788_v29 = vsel %vm309_vm1, %v366_v58, 0.0  ;;  %v1792_v30 = vsel %vm309_vm1, %v367_v59, 0.0  ;;  %v1796_v31 = vsel %vm309_vm1, %v368_v60, 0.0  ;;  %v1800_v32 = vsel %vm309_vm1, %v369_v61, 0.0  ;;  %p1369_p2 = pneg %p1368_p1 }
  0x70   : > { %2410 = vst [vmem:[#allocation33_spill] sm:$0xff] %v1689_v38  ;;  %v1804_v33 = vsel %vm309_vm1, %v370_v62, 0.0  ;;  %v1808_v34 = vsel %vm309_vm1, %v371_v63, 0.0  ;;  %v1812_v35 = vsel %vm309_vm1, %v372_v0, 0.0  ;;  %v1816_v36 = vsel %vm309_vm1, %v373_v14, 0.0 }
  0x71   : > { %2411 = vst [vmem:[#allocation34_spill] sm:$0xff] %v1693_v39  ;;  %v1820_v53 = vsel %vm309_vm1, %v374_v18, 0.0  ;;  %v1824_v54 = vsel %vm309_vm1, %v375_v23, 0.0  ;;  %v395_v55 = vmul.f32 %v1660_v20, %v1685_v37  ;;  %v396_v56 = vmul.f32 %v1660_v20, %v1689_v38  ;;  %p1374_p7 = pnand %p1373_p5, %p1369_p2 }
  0x72   : > { %2412 = vst [vmem:[#allocation35_spill] sm:$0xff] %v1697_v40  ;;  %v397_v57 = vmul.f32 %v1660_v20, %v1693_v39  ;;  %v398_v58 = vmul.f32 %v1660_v20, %v1697_v40  ;;  %v399_v59 = vmul.f32 %v1660_v20, %v1701_v41  ;;  %v400_v1 = vmul.f32 %v1660_v20, %v1705_v42 }
  0x73   : > { %2413 = vst [vmem:[#allocation36_spill] sm:$0xff] %v1701_v41  ;;  %v401_v60 = vmul.f32 %v1660_v20, %v1709_v43  ;;  %v402_v61 = vmul.f32 %v1660_v20, %v1713_v44  ;;  %v403_v62 = vmul.f32 %v1660_v20, %v1717_v45  ;;  %v404_v63 = vmul.f32 %v1660_v20, %v1721_v46 }
  0x74   : > { %2414 = vst [vmem:[#allocation37_spill] sm:$0xff] %v1705_v42  ;;  %v411_v0 = vperm.slane %v1611_v2, 4  ;;  %v405_v14 = vmul.f32 %v1660_v20, %v1725_v47  ;;  %v406_v18 = vmul.f32 %v1660_v20, %v1729_v48  ;;  %v407_v23 = vmul.f32 %v1660_v20, %v1733_v49 }
  0x75   : > { %2415 = vst [vmem:[#allocation38_spill] sm:$0xff] %v1709_v43  ;;  %v444_v43 = vperm.slane %v1611_v2, 5  ;;  %v1861_v42 = vperm.slane %v1611_v2, 0 }
  0x76   : > { %2416 = vst [vmem:[#allocation39_spill] sm:$0xff] %v1713_v44  ;;  %v408_v44 = vmul.f32 %v1660_v20, %v1737_v50  ;;  %v416_v41 = vmul.f32 %v411_v0, %v1626_v7  ;;  %v417_v40 = vmul.f32 %v411_v0, %v1629_v8  ;;  %v420_v39 = vmul.f32 %v411_v0, %v1639_v11 }
  0x77   : > { %2417 = vst [vmem:[#allocation40_spill] sm:$0xff] %v1717_v45  ;;  %v409_v45 = vmul.f32 %v1660_v20, %v1741_v51  ;;  %v426_v7 = vmul.f32 %v411_v0, %v1664_v21  ;;  %v427_v8 = vmul.f32 %v411_v0, %v1667_v22  ;;  %v445_v21 = vmul.f32 %v444_v43, %v1764_v24  ;;  %v2477_v22 = vld [vmem:[#allocation25_spill] sm:$0xff] }
  0x78   : > { %2418 = vst [vmem:[#allocation41_spill] sm:$0xff] %v1721_v46  ;;  %v410_v46 = vmul.f32 %v1660_v20, %v1745_v52  ;;  %v414_v20 = vmul.f32 %v411_v0, %v1620_v5  ;;  %v424_v5 = vmul.f32 %v411_v0, %v1652_v16  ;;  %v433_v11 = vadd.f32 %v417_v40, %v400_v1 }
  0x79   : > { %2419 = vst [vmem:[#allocation42_spill] sm:$0xff] %v1725_v47  ;;  %v412_v47 = vmul.f32 %v411_v0, %v1614_v3  ;;  %v418_v3 = vmul.f32 %v411_v0, %v1632_v9  ;;  %v451_v40 = vmul.f32 %v444_v43, %v1788_v29 }
  0x7a   : > { %2420 = vst [vmem:[#allocation43_spill] sm:$0xff] %v1729_v48  ;;  %v1865_v48 = vperm.slane %v1611_v2, 1  ;;  %v430_v38 = vadd.f32 %v414_v20, %v397_v57 }
  0x7b   : > { %2421 = vst [vmem:[#allocation44_spill] sm:$0xff] %v1733_v49  ;;  %v1868_v49 = vperm.slane %v1611_v2, 2  ;;  %v434_v37 = vadd.f32 %v418_v3, %v401_v60  ;;  %v449_v3 = vmul.f32 %v444_v43, %v1780_v28 }
  0x7c   : > { %2422 = vst [vmem:[#allocation45_spill] sm:$0xff] %v1737_v50  ;;  %v1871_v50 = vperm.slane %v1611_v2, 6  ;;  %v423_v2 = vmul.f32 %v411_v0, %v1649_v15 }
  0x7d   : > { %2423 = vst [vmem:[#allocation46_spill] sm:$0xff] %v1741_v51  ;;  %v413_v51 = vmul.f32 %v411_v0, %v1617_v4  ;;  %v428_v4 = vadd.f32 %v412_v47, %v395_v55  ;;  %v446_v47 = vmul.f32 %v444_v43, %v1768_v25 }
  0x7e   : > { %2424 = vst [vmem:[#allocation47_spill] sm:$0xff] %v1745_v52  ;;  %v415_v52 = vmul.f32 %v411_v0, %v1623_v6  ;;  %v425_v6 = vmul.f32 %v411_v0, %v1655_v17  ;;  %v439_v15 = vadd.f32 %v423_v2, %v406_v18  ;;  %v1888_v17 = vadd.f32 %v427_v8, %v410_v46  ;;  %v2461_v18 = vld [vmem:[#allocation37_spill] sm:$0xff]  ;;  %v2463_v20 = vld [vmem:[#allocation40_spill] sm:$0xff] }
  0x7f   : > { %2425 = vst [vmem:[#allocation48_spill] sm:$0xff] %v1792_v30  ;;  %v429_v9 = vadd.f32 %v413_v51, %v396_v56  ;;  %v447_v51 = vmul.f32 %v444_v43, %v1772_v26  ;;  %v452_v2 = vmul.f32 %v444_v43, %v1792_v30  ;;  %v456_v8 = vmul.f32 %v444_v43, %v1808_v34 }
  0x80   : > { %2426 = vst [vmem:[#allocation49_spill] sm:$0xff] %v1812_v35  ;;  %v441_v16 = vadd.f32 %v425_v6, %v408_v44  ;;  %v442_v35 = vadd.f32 %v426_v7, %v409_v45  ;;  %v454_v6 = vmul.f32 %v444_v43, %v1800_v32  ;;  %v455_v7 = vmul.f32 %v444_v43, %v1804_v33 }
  0x81   : > { %2427 = vst [vmem:[#allocation50_spill] sm:$0xff] %v1816_v36  ;;  %v440_v36 = vadd.f32 %v424_v5, %v407_v23  ;;  %v453_v5 = vmul.f32 %v444_v43, %v1796_v31  ;;  %v1908_v56 = vadd.f32 %v445_v21, %v428_v4  ;;  %v1910_v57 = vadd.f32 %v446_v47, %v429_v9 }
  0x82   : > { %2428 = vst [vmem:[#allocation51_spill] sm:$0xff] %v1820_v53  ;;  %v1930_v9 = vadd.f32 %v456_v8, %v439_v15  ;;  %v2460_v15 = vld [vmem:[#allocation36_spill] sm:$0xff] }
  0x83   : > { %2429 = vst [vmem:[#allocation52_spill] sm:$0xff] %v1824_v54  ;;  %v436_v54 = vadd.f32 %v420_v39, %v403_v62  ;;  %v450_v39 = vmul.f32 %v444_v43, %v1784_v19 }
  0x84   : > { %2430 = vst [vmem:[#allocation53_spill] sm:$0xff] %v1861_v42  ;;  %v432_v42 = vadd.f32 %v416_v41, %v399_v59  ;;  %v448_v41 = vmul.f32 %v444_v43, %v1776_v27 }
  0x85   : > { %2431 = vst [vmem:[#allocation54_spill] sm:$0xff] %v1865_v48  ;;  %v419_v48 = vmul.f32 %v411_v0, %v1635_v10  ;;  %v431_v10 = vadd.f32 %v415_v52, %v398_v58  ;;  %v1912_v58 = vadd.f32 %v447_v51, %v430_v38  ;;  %v1918_v60 = vadd.f32 %v450_v39, %v433_v11  ;;  %v2455_v11 = vld [vmem:[#allocation32_spill] sm:$0xff]  ;;  %v2464_v51 = vld [vmem:[#allocation41_spill] sm:$0xff] }
  0x86   : > { %2432 = vst [vmem:[#allocation55_spill] sm:$0xff] %v1868_v49  ;;  %v421_v49 = vmul.f32 %v411_v0, %v1642_v12  ;;  %v1916_v1 = vadd.f32 %v449_v3, %v432_v42  ;;  %v2465_v3 = vld [vmem:[#allocation42_spill] sm:$0xff] }
  0x87   : > { %2433 = vst [vmem:[#allocation56_spill] sm:$0xff] %v1871_v50  ;;  %v422_v50 = vmul.f32 %v411_v0, %v1645_v13  ;;  %v435_v12 = vadd.f32 %v419_v48, %v402_v61  ;;  %v2435_v44 = vld [vmem:[#allocation49_spill] sm:$0xff]  ;;  %v1914_v59 = vadd.f32 %v448_v41, %v431_v10  ;;  %v1920_v61 = vadd.f32 %v451_v40, %v434_v37  ;;  %v2466_v40 = vld [vmem:[#allocation43_spill] sm:$0xff] }
  0x88   : > { %v437_v13 = vadd.f32 %v421_v49, %v404_v63  ;;  %2434 = vst [vmem:[#allocation57_spill] sm:$0xff] %v1888_v17  ;;  %v457_v45 = vmul.f32 %v444_v43, %v2435_v44  ;;  %v2436_v46 = vld [vmem:[#allocation50_spill] sm:$0xff]  ;;  %v1924_v63 = vadd.f32 %v453_v5, %v436_v54  ;;  %v2457_v0 = vld [vmem:[#allocation33_spill] sm:$0xff]  ;;  %v2467_v5 = vld [vmem:[#allocation44_spill] sm:$0xff] }
  0x89   : > { %v438_v53 = vadd.f32 %v422_v50, %v405_v14  ;;  %v458_v48 = vmul.f32 %v444_v43, %v2436_v46  ;;  %v2437_v49 = vld [vmem:[#allocation51_spill] sm:$0xff]  ;;  %2440 = vst [vmem:[#allocation50_spill] sm:$0xff] %v1908_v56  ;;  %v1922_v62 = vadd.f32 %v452_v2, %v435_v12  ;;  %v2458_v54 = vld [vmem:[#allocation34_spill] sm:$0xff] }
  0x8a   : > { %v459_v50 = vmul.f32 %v444_v43, %v2437_v49  ;;  %v2438_v52 = vld [vmem:[#allocation52_spill] sm:$0xff]  ;;  %2441 = vst [vmem:[#allocation58_spill] sm:$0xff] %v1910_v57  ;;  %v1932_v21 = vadd.f32 %v457_v45, %v440_v36  ;;  %v2459_v14 = vld [vmem:[#allocation35_spill] sm:$0xff]  ;;  %v2475_v49 = vld [vmem:[#allocation22_spill] sm:$0xff] }
  0x8b   : > { %v1906_v55 = vmul.f32 %v444_v43, %v2438_v52  ;;  %2442 = vst [vmem:[#allocation59_spill] sm:$0xff] %v1912_v58  ;;  %v1926_v43 = vadd.f32 %v454_v6, %v437_v13  ;;  %v1928_v4 = vadd.f32 %v455_v7, %v438_v53  ;;  %v1934_v10 = vadd.f32 %v458_v48, %v441_v16  ;;  %v2456_v42 = vld [vmem:[#allocation53_spill] sm:$0xff]  ;;  %v2468_v7 = vld [vmem:[#allocation16_spill] sm:$0xff]  ;;  %v2482_v56 = vld [vmem:[#allocation27_spill] sm:$0xff] }
  0x8c   : > { %2443 = vst [vmem:[#allocation60_spill] sm:$0xff] %v1914_v59  ;;  %v1936_v38 = vadd.f32 %v459_v50, %v442_v35  ;;  %v579_v37 = vmul.f32 %v2456_v42, %v2455_v11  ;;  %v580_v12 = vmul.f32 %v2456_v42, %v2457_v0  ;;  %v581_v13 = vmul.f32 %v2456_v42, %v2458_v54  ;;  %v2462_v35 = vld [vmem:[#allocation38_spill] sm:$0xff]  ;;  %v2470_v48 = vld [vmem:[#allocation17_spill] sm:$0xff] }
  0x8d   : > { %2439 = vst [vmem:[#allocation49_spill] sm:$0xff] %v1906_v55  ;;  %v582_v53 = vmul.f32 %v2456_v42, %v2459_v14  ;;  %v583_v36 = vmul.f32 %v2456_v42, %v2460_v15  ;;  %v584_v16 = vmul.f32 %v2456_v42, %v2461_v18  ;;  %v585_v23 = vmul.f32 %v2456_v42, %v2462_v35  ;;  %v2469_v8 = vld [vmem:[#allocation54_spill] sm:$0xff]  ;;  %v2472_v55 = vld [vmem:[#allocation19_spill] sm:$0xff]  ;;  %v2474_v52 = vld [vmem:[#allocation21_spill] sm:$0xff] }
  0x8e   : > { %2444 = vst [vmem:[#allocation61_spill] sm:$0xff] %v1916_v1  ;;  %v586_v47 = vmul.f32 %v2456_v42, %v2463_v20  ;;  %v587_v41 = vmul.f32 %v2456_v42, %v2464_v51  ;;  %v588_v39 = vmul.f32 %v2456_v42, %v2465_v3  ;;  %v589_v2 = vmul.f32 %v2456_v42, %v2466_v40  ;;  %v2471_v11 = vld [vmem:[#allocation18_spill] sm:$0xff] }
  0x8f   : > { %2445 = vst [vmem:[#allocation62_spill] sm:$0xff] %v1918_v60  ;;  %v590_v6 = vmul.f32 %v2456_v42, %v2467_v5  ;;  %v594_v45 = vmul.f32 %v2469_v8, %v2468_v7  ;;  %v595_v50 = vmul.f32 %v2469_v8, %v2470_v48  ;;  %v596_v20 = vmul.f32 %v2469_v8, %v2471_v11  ;;  %v2478_v40 = vld [vmem:[#allocation26_spill] sm:$0xff] }
  0x90   : > { %2446 = vst [vmem:[#allocation63_spill] sm:$0xff] %v1920_v61  ;;  %v597_v17 = vmul.f32 %v2469_v8, %v2472_v55  ;;  %v602_v5 = vmul.f32 %v2469_v8, %v2477_v22  ;;  %v603_v3 = vmul.f32 %v2469_v8, %v2478_v40  ;;  %v2480_v51 = vld [vmem:[#allocation46_spill] sm:$0xff]  ;;  %v2483_v61 = vld [vmem:[#allocation28_spill] sm:$0xff] }
  0x91   : > { %2447 = vst [vmem:[#allocation64_spill] sm:$0xff] %v1922_v62  ;;  %v604_v62 = vmul.f32 %v2469_v8, %v2482_v56  ;;  %v605_v60 = vmul.f32 %v2469_v8, %v2483_v61  ;;  %v2485_v22 = vld [vmem:[#allocation30_spill] sm:$0xff]  ;;  %v608_v40 = vadd.f32 %v594_v45, %v579_v37  ;;  %v2486_v61 = vld [vmem:[#allocation55_spill] sm:$0xff] }
  0x92   : > { %2448 = vst [vmem:[#allocation65_spill] sm:$0xff] %v1924_v63  ;;  %v2476_v63 = vld [vmem:[#allocation24_spill] sm:$0xff]  ;;  %v1996_v59 = vmul.f32 %v2469_v8, %v2485_v22  ;;  %v611_v35 = vadd.f32 %v597_v17, %v582_v53  ;;  %v616_v57 = vadd.f32 %v602_v5, %v587_v41  ;;  %v617_v56 = vadd.f32 %v603_v3, %v588_v39  ;;  %v2036_v5 = vld [vmem:[%s1602_s23 + $0x8] ss:$0 sm:$0xff] }
  0x93   : > { %2449 = vst [vmem:[#allocation66_spill] sm:$0xff] %v1926_v43  ;;  %v601_v7 = vmul.f32 %v2469_v8, %v2476_v63  ;;  %v1986_v43 = vmul.f32 %v2456_v42, %v2480_v51  ;;  %v2484_v63 = vld [vmem:[#allocation29_spill] sm:$0xff]  ;;  %v623_v18 = vmul.f32 %v2486_v61, %v1764_v24  ;;  %v619_v37 = vadd.f32 %v605_v60, %v590_v6 }
  0x94   : > { %2450 = vst [vmem:[#allocation67_spill] sm:$0xff] %v1928_v4  ;;  %v2479_v4 = vld [vmem:[#allocation45_spill] sm:$0xff]  ;;  %v606_v1 = vmul.f32 %v2469_v8, %v2484_v63  ;;  %v624_v63 = vmul.f32 %v2486_v61, %v1768_v25  ;;  %v626_v17 = vmul.f32 %v2486_v61, %v1776_v27  ;;  %v629_v24 = vmul.f32 %v2486_v61, %v1788_v29 }
  0x95   : > { %2451 = vst [vmem:[#allocation68_spill] sm:$0xff] %v1930_v9  ;;  %v600_v9 = vmul.f32 %v2469_v8, %v2475_v49  ;;  %v591_v30 = vmul.f32 %v2456_v42, %v2479_v4  ;;  %v609_v49 = vadd.f32 %v595_v50, %v580_v12  ;;  %v610_v4 = vadd.f32 %v596_v20, %v581_v13 }
  0x96   : > { %2452 = vst [vmem:[#allocation69_spill] sm:$0xff] %v1932_v21  ;;  %v599_v21 = vmul.f32 %v2469_v8, %v2474_v52  ;;  %v615_v51 = vadd.f32 %v601_v7, %v586_v47  ;;  %v618_v52 = vadd.f32 %v604_v62, %v589_v2  ;;  %v628_v62 = vmul.f32 %v2486_v61, %v1784_v19  ;;  %v2488_v47 = vld [vmem:[#allocation56_spill] sm:$0xff] }
  0x97   : > { %2453 = vst [vmem:[#allocation70_spill] sm:$0xff] %v1934_v10  ;;  %v620_v12 = vadd.f32 %v606_v1, %v591_v30  ;;  %v631_v30 = vmul.f32 %v2486_v61, %v1800_v32  ;;  %v632_v1 = vmul.f32 %v2486_v61, %v1804_v33  ;;  %v633_v60 = vmul.f32 %v2486_v61, %v1808_v34 }
  0x98   : > { %2454 = vst [vmem:[#allocation71_spill] sm:$0xff] %v1936_v38  ;;  %v2473_v38 = vld [vmem:[#allocation20_spill] sm:$0xff]  ;;  %v613_v42 = vadd.f32 %v599_v21, %v584_v16  ;;  %v630_v21 = vmul.f32 %v2486_v61, %v1796_v31  ;;  %v634_v53 = vmul.f32 %v2486_v61, %v2435_v44  ;;  %v637_v16 = vadd.f32 %v623_v18, %v608_v40 }
  0x99   : > { %v598_v10 = vmul.f32 %v2469_v8, %v2473_v38  ;;  %2481 = vst [vmem:[#allocation32_spill] sm:$0xff] %v1986_v43  ;;  %v614_v43 = vadd.f32 %v600_v9, %v585_v23  ;;  %v625_v8 = vmul.f32 %v2486_v61, %v1772_v26  ;;  %v627_v9 = vmul.f32 %v2486_v61, %v1780_v28 }
  0x9a   : > { %v638_v31 = vadd.f32 %v624_v63, %v609_v49  ;;  %v765_v41 = vmul.f32 %v2488_v47, %v2457_v0  ;;  %v766_v3 = vmul.f32 %v2488_v47, %v2458_v54  ;;  %v640_v6 = vadd.f32 %v626_v17, %v611_v35  ;;  %v2491_v63 = vld [vmem:[#allocation58_spill] sm:$0xff] }
  0x9b   : > { %v612_v58 = vadd.f32 %v598_v10, %v583_v36  ;;  %v2487_v10 = vld [vmem:[#allocation15_spill] sm:$0xff]  ;;  %v635_v36 = vmul.f32 %v2486_v61, %v2436_v46  ;;  %v639_v23 = vadd.f32 %v625_v8, %v610_v4  ;;  %v767_v49 = vmul.f32 %v2488_v47, %v2459_v14  ;;  %v2493_v17 = vld [vmem:[#allocation38_spill] sm:$0xff] }
  0x9c   : > { %v2015_v13 = vperm.slane %v2487_v10, 7  ;;  %v642_v0 = vadd.f32 %v628_v62, %v613_v42  ;;  %v643_v18 = vadd.f32 %v629_v24, %v614_v43  ;;  %v644_v40 = vadd.f32 %v630_v21, %v615_v51  ;;  %v2489_v43 = vld [vmem:[#allocation37_spill] sm:$0xff]  ;;  %v2495_v10 = vld [vmem:[#allocation60_spill] sm:$0xff] }
  0x9d   : > { %v641_v45 = vadd.f32 %v627_v9, %v612_v58  ;;  %v645_v54 = vadd.f32 %v631_v30, %v616_v57  ;;  %v2042_v50 = vadd.f32 %v632_v1, %v617_v56  ;;  %v809_v14 = vmul.f32 %v2036_v5, %v1768_v25  ;;  %v2490_v57 = vld [vmem:[#allocation21_spill] sm:$0xff]  ;;  %v2492_v25 = vld [vmem:[#allocation59_spill] sm:$0xff]  ;;  %v2494_v9 = vld [vmem:[#allocation22_spill] sm:$0xff] }
  0x9e   : > { %v780_v39 = vmul.f32 %v2015_v13, %v2470_v48  ;;  %v781_v2 = vmul.f32 %v2015_v13, %v2471_v11  ;;  %v782_v4 = vmul.f32 %v2015_v13, %v2472_v55  ;;  %v2044_v48 = vadd.f32 %v633_v60, %v618_v52  ;;  %v2497_v60 = vld [vmem:[#allocation23_spill] sm:$0xff] }
  0x9f   : > { %v768_v11 = vmul.f32 %v2488_v47, %v2460_v15  ;;  %v783_v58 = vmul.f32 %v2015_v13, %v2473_v38  ;;  %v810_v55 = vmul.f32 %v2036_v5, %v1772_v26  ;;  %v769_v56 = vmul.f32 %v2488_v47, %v2489_v43  ;;  %v2504_v43 = vld [vmem:[#allocation41_spill] sm:$0xff] }
  0xa0   : > { %v794_v35 = vadd.f32 %v780_v39, %v765_v41  ;;  %v795_v20 = vadd.f32 %v781_v2, %v766_v3  ;;  %v784_v52 = vmul.f32 %v2015_v13, %v2490_v57  ;;  %v796_v51 = vadd.f32 %v782_v4, %v767_v49  ;;  %v2498_v41 = vld [vmem:[#allocation61_spill] sm:$0xff]  ;;  %v2499_v39 = vld [vmem:[#allocation62_spill] sm:$0xff]  ;;  %v2506_v57 = vld [vmem:[#allocation48_spill] sm:$0xff] }
  0xa1   : > { %v811_v15 = vmul.f32 %v2036_v5, %v1776_v27  ;;  %v2060_v7 = vadd.f32 %v634_v53, %v619_v37  ;;  %v2062_v38 = vadd.f32 %v635_v36, %v620_v12  ;;  %v651_v42 = vadd.f32 %v637_v16, %v2491_v63  ;;  %v2496_v37 = vld [vmem:[#allocation39_spill] sm:$0xff] }
  0xa2   : > { %v652_v8 = vadd.f32 %v638_v31, %v2492_v25  ;;  %v770_v26 = vmul.f32 %v2488_v47, %v2493_v17  ;;  %v785_v62 = vmul.f32 %v2015_v13, %v2494_v9  ;;  %v797_v24 = vadd.f32 %v783_v58, %v768_v11  ;;  %v2508_v25 = vld [vmem:[#allocation42_spill] sm:$0xff]  ;;  %v2509_v17 = vld [vmem:[#allocation43_spill] sm:$0xff]  ;;  %v2510_v9 = vld [vmem:[#allocation44_spill] sm:$0xff] }
  0xa3   : > { %v812_v21 = vmul.f32 %v2036_v5, %v1780_v28  ;;  %v653_v27 = vadd.f32 %v639_v23, %v2495_v10  ;;  %v771_v12 = vmul.f32 %v2488_v47, %v2496_v37  ;;  %v823_v30 = vadd.f32 %v809_v14, %v794_v35  ;;  %v2500_v28 = vld [vmem:[#allocation63_spill] sm:$0xff]  ;;  %v2501_v23 = vld [vmem:[#allocation64_spill] sm:$0xff] }
  0xa4   : > { %v824_v1 = vadd.f32 %v810_v55, %v795_v20  ;;  %v786_v53 = vmul.f32 %v2015_v13, %v2497_v60  ;;  %v798_v36 = vadd.f32 %v784_v52, %v769_v56  ;;  %v813_v16 = vmul.f32 %v2036_v5, %v1784_v19  ;;  %v2502_v20 = vld [vmem:[#allocation50_spill] sm:$0xff]  ;;  %v2505_v56 = vld [vmem:[#allocation25_spill] sm:$0xff]  ;;  %v2512_v37 = vld [vmem:[#allocation27_spill] sm:$0xff] }
  0xa5   : > { %v825_v31 = vadd.f32 %v811_v15, %v796_v51  ;;  %v654_v3 = vadd.f32 %v640_v6, %v2498_v41  ;;  %v655_v2 = vadd.f32 %v641_v45, %v2499_v39  ;;  %v656_v49 = vadd.f32 %v642_v0, %v2500_v28  ;;  %v2503_v55 = vld [vmem:[#allocation66_spill] sm:$0xff]  ;;  %v2507_v15 = vld [vmem:[#allocation67_spill] sm:$0xff]  ;;  %v2515_v28 = vld [vmem:[#allocation28_spill] sm:$0xff] }
  0xa6   : > { %v2083_v4 = vadd.f32 %v643_v18, %v2501_v23  ;;  %v799_v11 = vadd.f32 %v785_v62, %v770_v26  ;;  %v814_v58 = vmul.f32 %v2036_v5, %v1788_v29  ;;  %v826_v35 = vadd.f32 %v812_v21, %v797_v24  ;;  %v2514_v41 = vld [vmem:[#allocation46_spill] sm:$0xff] }
  0xa7   : > { %v2088_v14 = vadd.f32 %v823_v30, %v2502_v20  ;;  %v658_v19 = vadd.f32 %v644_v40, %v2503_v55  ;;  %v772_v6 = vmul.f32 %v2488_v47, %v2504_v43  ;;  %v787_v45 = vmul.f32 %v2015_v13, %v2505_v56  ;;  %v2516_v20 = vld [vmem:[#allocation29_spill] sm:$0xff] }
  0xa8   : > { %v2095_v0 = vadd.f32 %v824_v1, %v651_v42  ;;  %v800_v18 = vadd.f32 %v786_v53, %v771_v12  ;;  %v815_v52 = vmul.f32 %v2036_v5, %v2506_v57  ;;  %v827_v51 = vadd.f32 %v813_v16, %v798_v36  ;;  %v2511_v42 = vld [vmem:[#allocation26_spill] sm:$0xff]  ;;  %v2513_v16 = vld [vmem:[#allocation45_spill] sm:$0xff] }
  0xa9   : > { %v2099_v29 = vadd.f32 %v825_v31, %v652_v8  ;;  %v659_v63 = vadd.f32 %v645_v54, %v2507_v15  ;;  %v773_v40 = vmul.f32 %v2488_v47, %v2508_v25  ;;  %v774_v26 = vmul.f32 %v2488_v47, %v2509_v17 }
  0xaa   : > { %v775_v62 = vmul.f32 %v2488_v47, %v2510_v9  ;;  %v788_v24 = vmul.f32 %v2015_v13, %v2511_v42  ;;  %v828_v21 = vadd.f32 %v814_v58, %v799_v11  ;;  %v2110_v10 = vadd.f32 %v826_v35, %v653_v27 }
  0xab   : > { %v881_v8 = vadd.f32 %v2095_v0, %v2088_v14  ;;  %v789_v54 = vmul.f32 %v2015_v13, %v2512_v37  ;;  %v801_v12 = vadd.f32 %v787_v45, %v772_v6  ;;  %v902_v30 = vmul.f32 %v2088_v14, %v2088_v14  ;;  %v2520_v37 = vld [vmem:[#allocation68_spill] sm:$0xff] }
  0xac   : > { %v903_v1 = vmul.f32 %v2095_v0, %v2095_v0  ;;  %v816_v60 = vmul.f32 %v2036_v5, %v1800_v32  ;;  %v829_v53 = vadd.f32 %v815_v52, %v800_v18  ;;  %v2122_v36 = vadd.f32 %v827_v51, %v654_v3 }
  0xad   : > { %v882_v27 = vadd.f32 %v881_v8, %v2099_v29  ;;  %v776_v31 = vmul.f32 %v2488_v47, %v2513_v16  ;;  %v777_v39 = vmul.f32 %v2488_v47, %v2514_v41  ;;  %v790_v23 = vmul.f32 %v2015_v13, %v2515_v28  ;;  %v2519_v8 = vld [vmem:[#allocation65_spill] sm:$0xff]  ;;  %v2523_v28 = vld [vmem:[#allocation52_spill] sm:$0xff] }
  0xae   : > { %v904_v11 = vmul.f32 %v2099_v29, %v2099_v29  ;;  %v802_v58 = vadd.f32 %v788_v24, %v773_v40  ;;  %v817_v32 = vmul.f32 %v2036_v5, %v1804_v33  ;;  %v2135_v3 = vadd.f32 %v828_v21, %v655_v2  ;;  %v2517_v2 = vld [vmem:[#allocation47_spill] sm:$0xff]  ;;  %v2522_v16 = vld [vmem:[#allocation69_spill] sm:$0xff] }
  0xaf   : > { %v883_v35 = vadd.f32 %v882_v27, %v2110_v10  ;;  %v791_v55 = vmul.f32 %v2015_v13, %v2516_v20  ;;  %v803_v43 = vadd.f32 %v789_v54, %v774_v26  ;;  %v905_v6 = vmul.f32 %v2110_v10, %v2110_v10  ;;  %v2518_v26 = vld [vmem:[#allocation31_spill] sm:$0xff] }
  0xb0   : > { %v918_v56 = vadd.f32 %v903_v1, %v902_v30  ;;  %v818_v45 = vmul.f32 %v2036_v5, %v1808_v34  ;;  %v830_v18 = vadd.f32 %v816_v60, %v801_v12  ;;  %v2144_v57 = vadd.f32 %v829_v53, %v656_v49  ;;  %v2521_v1 = vld [vmem:[#allocation51_spill] sm:$0xff] }
  0xb1   : > { %v884_v33 = vadd.f32 %v883_v35, %v2122_v36  ;;  %v778_v52 = vmul.f32 %v2488_v47, %v2517_v2  ;;  %v792_v51 = vmul.f32 %v2015_v13, %v2485_v22  ;;  %v906_v15 = vmul.f32 %v2122_v36, %v2122_v36 }
  0xb2   : > { %v919_v25 = vadd.f32 %v918_v56, %v904_v11  ;;  %v804_v40 = vadd.f32 %v790_v23, %v775_v62  ;;  %v819_v17 = vmul.f32 %v2036_v5, %v2435_v44  ;;  %v831_v34 = vadd.f32 %v817_v32, %v802_v58 }
  0xb3   : > { %v885_v49 = vadd.f32 %v884_v33, %v2135_v3  ;;  %v793_v9 = vmul.f32 %v2015_v13, %v2518_v26  ;;  %v805_v42 = vadd.f32 %v791_v55, %v776_v31  ;;  %v907_v47 = vmul.f32 %v2135_v3, %v2135_v3 }
  0xb4   : > { %v920_v24 = vadd.f32 %v919_v25, %v905_v6  ;;  %v820_v22 = vmul.f32 %v2036_v5, %v2436_v46  ;;  %v832_v21 = vadd.f32 %v818_v45, %v803_v43  ;;  %v2163_v62 = vadd.f32 %v830_v18, %v2519_v8  ;;  %v2525_v43 = vld [vmem:[#allocation70_spill] sm:$0xff]  ;;  %v2528_v25 = vld [vmem:[#allocation49_spill] sm:$0xff] }
  0xb5   : > { %v886_v44 = vadd.f32 %v885_v49, %v2144_v57  ;;  %v660_v54 = vadd.f32 %v2042_v50, %v2520_v37  ;;  %v806_v12 = vadd.f32 %v792_v51, %v777_v39  ;;  %v908_v13 = vmul.f32 %v2144_v57, %v2144_v57 }
  0xb6   : > { %v921_v30 = vadd.f32 %v920_v24, %v906_v15  ;;  %v821_v60 = vmul.f32 %v2036_v5, %v2521_v1  ;;  %v833_v53 = vadd.f32 %v819_v17, %v804_v40  ;;  %v2172_v27 = vadd.f32 %v831_v34, %v658_v19  ;;  %v2524_v19 = vld [vmem:[#allocation32_spill] sm:$0xff]  ;;  %v2527_v15 = vld [vmem:[#allocation57_spill] sm:$0xff] }
  0xb7   : > { %v887_v46 = vadd.f32 %v886_v44, %v2083_v4  ;;  %v661_v31 = vadd.f32 %v2044_v48, %v2522_v16  ;;  %v807_v41 = vadd.f32 %v793_v9, %v778_v52  ;;  %v909_v50 = vmul.f32 %v2083_v4, %v2083_v4 }
  0xb8   : > { %v922_v39 = vadd.f32 %v921_v30, %v907_v47  ;;  %v822_v23 = vmul.f32 %v2036_v5, %v2523_v28  ;;  %v834_v11 = vadd.f32 %v820_v22, %v805_v42  ;;  %v2181_v58 = vadd.f32 %v832_v21, %v659_v63 }
  0xb9   : > { %v888_v32 = vadd.f32 %v887_v46, %v2163_v62  ;;  %v621_v35 = vadd.f32 %v1996_v59, %v2524_v19  ;;  %v636_v20 = vmul.f32 %v2486_v61, %v2521_v1  ;;  %v910_v48 = vmul.f32 %v2163_v62, %v2163_v62  ;;  %v2526_v59 = vld [vmem:[#allocation71_spill] sm:$0xff] }
  0xba   : > { %v923_v55 = vadd.f32 %v922_v39, %v908_v13  ;;  %v662_v6 = vadd.f32 %v2060_v7, %v2525_v43  ;;  %v835_v56 = vadd.f32 %v821_v60, %v806_v12  ;;  %v2192_v5 = vadd.f32 %v833_v53, %v660_v54 }
  0xbb   : > { %v889_v63 = vadd.f32 %v888_v32, %v2172_v27  ;;  %v911_v45 = vmul.f32 %v2172_v27, %v2172_v27  ;;  %v663_v33 = vadd.f32 %v2062_v38, %v2526_v59  ;;  %v836_v61 = vadd.f32 %v822_v23, %v807_v41 }
  0xbc   : > { %v924_v18 = vadd.f32 %v923_v55, %v909_v50  ;;  %v2199_v2 = vadd.f32 %v834_v11, %v661_v31  ;;  %v912_v7 = vmul.f32 %v2181_v58, %v2181_v58  ;;  %v476_v40 = vadd.f32 %v2528_v25, %v2527_v15  ;;  %v957_v15 = vld [vmem:[%s303_s9] sm:$0x1] }
  0xbd   : > { %v890_v52 = vadd.f32 %v889_v63, %v2181_v58  ;;  %v650_v17 = vadd.f32 %v636_v20, %v621_v35  ;;  %v2206_v34 = vadd.f32 %v835_v56, %v662_v6  ;;  %v913_v38 = vmul.f32 %v2192_v5, %v2192_v5 }
  0xbe   : > { %v925_v51 = vadd.f32 %v924_v18, %v910_v48  ;;  %v2211_v9 = vadd.f32 %v836_v61, %v663_v33  ;;  %v914_v47 = vmul.f32 %v2199_v2, %v2199_v2  ;;  %v944_v61 = vld [vmem:[%s263_s7] sm:$0x1] }
  0xbf   : > { %v891_v49 = vadd.f32 %v890_v52, %v2192_v5  ;;  %v2216_v22 = vadd.f32 %v650_v17, %v476_v40  ;;  %v915_v8 = vmul.f32 %v2206_v34, %v2206_v34 }
  0xc0   : > { %v926_v26 = vadd.f32 %v925_v51, %v911_v45  ;;  %v916_v54 = vmul.f32 %v2211_v9, %v2211_v9 }
  0xc1   : > { %v892_v42 = vadd.f32 %v891_v49, %v2199_v2  ;;  %v917_v30 = vmul.f32 %v2216_v22, %v2216_v22 }
  0xc2   : > { %v927_v24 = vadd.f32 %v926_v26, %v912_v7 }
  0xc3   : > { %v893_v21 = vadd.f32 %v892_v42, %v2206_v34 }
  0xc4   : > { %v928_v44 = vadd.f32 %v927_v24, %v913_v38 }
  0xc5   : > { %v894_v37 = vadd.f32 %v893_v21, %v2211_v9 }
  0xc6   : > { %v929_v12 = vadd.f32 %v928_v44, %v914_v47 }
  0xc7   : > { %v895_v13 = vadd.f32 %v894_v37, %v2216_v22 }
  0xc8   : > { %v930_v1 = vadd.f32 %v929_v12, %v915_v8 }
  0xc9   : > { %v896_v60 = vrot.slane %v895_v13, 4 }
  0xca   : > { %v931_v53 = vadd.f32 %v930_v1, %v916_v54 }
  0xcb   : > { %v897_v46 = vadd.f32 %v896_v60, %v895_v13 }
  0xcc   : > { %v932_v16 = vadd.f32 %v931_v53, %v917_v30 }
  0xcd   : > { %v898_v31 = vrot.slane %v897_v46, 2 }
  0xce   : > { %v933_v41 = vrot.slane %v932_v16, 4 }
  0xcf   : > { %v899_v50 = vadd.f32 %v898_v31, %v897_v46 }
  0xd0   : > { %v934_v39 = vadd.f32 %v933_v41, %v932_v16 }
  0xd1   : > { %v900_v28 = vrot.slane %v899_v50, 1 }
  0xd2   : > { %v935_v23 = vrot.slane %v934_v39, 2 }
  0xd3   : > { %v901_v11 = vadd.f32 %v900_v28, %v899_v50 }
  0xd4   : > { %v936_v32 = vadd.f32 %v935_v23, %v934_v39 }
  0xd5   : > { %v939_v19 = vmul.f32 0.0078125, %v901_v11 }
  0xd6   : > { %v937_v35 = vrot.slane %v936_v32, 1 }
  0xd7   : > { %v941_v48 = vmul.f32 %v939_v19, %v939_v19 }
  0xd8   : > { %v938_v20 = vadd.f32 %v937_v35, %v936_v32 }
  0xda   : > { %v940_v55 = vmul.f32 0.0078125, %v938_v20 }
  0xdc   : > { %v942_v43 = vsub.f32 %v940_v55, %v941_v48 }
  0xde   : > { %v943_v6 = vmax.f32 %v942_v43, 0.0 }
  0xe0   : > { %v945_v56 = vadd.f32 1e-05, %v943_v6 }
  0xe2   : > { %1258 = vrsqrt.f32 %v945_v56  ;;  %vm952_vm2 = vweird.f32 %v945_v56 }
  0xe8   : > { %v1259_v63 = vpop.eup %1258 }
  0xe9   : > { %v947_v45 = vmul.f32 %v1259_v63, %v945_v56  ;;  %vm953_vm3 = vweird.f32 %v1259_v63 }
  0xea   : > { %vm954_vm4 = vmor %vm952_vm2, %vm953_vm3 }
  0xeb   : > { %v948_v18 = vmul.f32 %v1259_v63, %v947_v45 }
  0xed   : > { %v949_v59 = vmul.f32 0.5, %v948_v18 }
  0xef   : > { %v950_v33 = vsub.f32 1.5, %v949_v59 }
  0xf1   : > { %v951_v52 = vmul.f32 %v1259_v63, %v950_v33 }
  0xf3   : > { %v955_v7 = vsel %vm954_vm4, %v1259_v63, %v951_v52 }
  0xf4   : > { %v956_v51 = vmul.f32 %v955_v7, %v944_v61 }
  0xf6   : > { %v958_v25 = vmul.f32 %v956_v51, %v939_v19  ;;  %v961_v40 = vperm.slane %v956_v51, 0 }
  0xf8   : > { %v959_v17 = vsub.f32 %v957_v15, %v958_v25  ;;  %v963_v49 = vmul.f32 %v961_v40, %v2088_v14  ;;  %v964_v38 = vmul.f32 %v961_v40, %v2095_v0  ;;  %v965_v26 = vmul.f32 %v961_v40, %v2099_v29 }
  0xf9   : > { %v966_v42 = vmul.f32 %v961_v40, %v2110_v10  ;;  %v967_v47 = vmul.f32 %v961_v40, %v2122_v36  ;;  %v968_v24 = vmul.f32 %v961_v40, %v2135_v3  ;;  %v969_v8 = vmul.f32 %v961_v40, %v2144_v57 }
  0xfa   : > { %v980_v21 = vperm.slane %v959_v17, 0  ;;  %v970_v44 = vmul.f32 %v961_v40, %v2083_v4  ;;  %v971_v37 = vmul.f32 %v961_v40, %v2163_v62  ;;  %v972_v10 = vmul.f32 %v961_v40, %v2172_v27 }
  0xfb   : > { %v973_v36 = vmul.f32 %v961_v40, %v2181_v58  ;;  %v974_v4 = vmul.f32 %v961_v40, %v2192_v5  ;;  %v975_v58 = vmul.f32 %v961_v40, %v2199_v2  ;;  %v976_v5 = vmul.f32 %v961_v40, %v2206_v34 }
  0xfc   : > { %v982_v54 = vadd.f32 %v980_v21, %v963_v49  ;;  %v983_v14 = vadd.f32 %v980_v21, %v964_v38  ;;  %v984_v12 = vadd.f32 %v980_v21, %v965_v26  ;;  %v985_v0 = vadd.f32 %v980_v21, %v966_v42 }
  0xfd   : > { %v986_v13 = vadd.f32 %v980_v21, %v967_v47  ;;  %v987_v29 = vadd.f32 %v980_v21, %v968_v24  ;;  %v988_v60 = vadd.f32 %v980_v21, %v969_v8  ;;  %v989_v53 = vadd.f32 %v980_v21, %v970_v44 }
  0xfe   : > { %v998_v30 = vmax.f32 %v982_v54, 0.0  ;;  %v999_v3 = vmax.f32 %v983_v14, 0.0  ;;  %v1000_v1 = vmax.f32 %v984_v12, 0.0  ;;  %v1001_v57 = vmax.f32 %v985_v0, 0.0 }
  0xff   : > { %v1002_v62 = vmax.f32 %v986_v13, 0.0  ;;  %v990_v27 = vadd.f32 %v980_v21, %v971_v37  ;;  %v1003_v46 = vmax.f32 %v987_v29, 0.0  ;;  %v991_v16 = vadd.f32 %v980_v21, %v972_v10 }
 0x100   : > { %1014 = vst [vmem:[%s2247_s22] sm:$0xff] %v998_v30  ;;  %v1004_v31 = vmax.f32 %v988_v60, 0.0  ;;  %v992_v41 = vadd.f32 %v980_v21, %v973_v36  ;;  %v977_v50 = vmul.f32 %v961_v40, %v2211_v9  ;;  %v1005_v39 = vmax.f32 %v989_v53, 0.0 }
 0x101   : > { %1015 = vst [vmem:[%s2247_s22 + $0x8] sm:$0xff] %v999_v3  ;;  %v993_v28 = vadd.f32 %v980_v21, %v974_v4  ;;  %v978_v23 = vmul.f32 %v961_v40, %v2216_v22  ;;  %v1006_v2 = vmax.f32 %v990_v27, 0.0  ;;  %v994_v11 = vadd.f32 %v980_v21, %v975_v58 }
 0x102   : > { %1016 = vst [vmem:[%s2247_s22 + $0x10] sm:$0xff] %v1000_v1  ;;  %v1007_v34 = vmax.f32 %v991_v16, 0.0  ;;  %v995_v32 = vadd.f32 %v980_v21, %v976_v5  ;;  %v1008_v9 = vmax.f32 %v992_v41, 0.0  ;;  %v996_v19 = vadd.f32 %v980_v21, %v977_v50 }
 0x103   : > { %1017 = vst [vmem:[%s2247_s22 + $0x18] sm:$0xff] %v1001_v57  ;;  %v1009_v22 = vmax.f32 %v993_v28, 0.0  ;;  %v997_v35 = vadd.f32 %v980_v21, %v978_v23  ;;  %v1010_v20 = vmax.f32 %v994_v11, 0.0 }
 0x104   : > { %1018 = vst [vmem:[%s2247_s22 + $0x20] sm:$0xff] %v1002_v62  ;;  %v1011_v48 = vmax.f32 %v995_v32, 0.0  ;;  %v1012_v55 = vmax.f32 %v996_v19, 0.0 }
 0x105   : > { %1019 = vst [vmem:[%s2247_s22 + $0x28] sm:$0xff] %v1003_v46  ;;  %v1013_v43 = vmax.f32 %v997_v35, 0.0 }
 0x106   : > { %1020 = vst [vmem:[%s2247_s22 + $0x30] sm:$0xff] %v1004_v31 }
 0x107   : > { %1021 = vst [vmem:[%s2247_s22 + $0x38] sm:$0xff] %v1005_v39 }
 0x108   : > { %1022 = vst [vmem:[%s2247_s22 + $0x40] sm:$0xff] %v1006_v2 }
 0x109   : > { %1023 = vst [vmem:[%s2247_s22 + $0x48] sm:$0xff] %v1007_v34 }
 0x10a   : > { %1024 = vst [vmem:[%s2247_s22 + $0x50] sm:$0xff] %v1008_v9 }
 0x10b   : > { %1025 = vst [vmem:[%s2247_s22 + $0x58] sm:$0xff] %v1009_v22 }
 0x10c   : > { %1026 = vst [vmem:[%s2247_s22 + $0x60] sm:$0xff] %v1010_v20 }
 0x10d   : > { %1027 = vst [vmem:[%s2247_s22 + $0x68] sm:$0xff] %v1011_v48 }
 0x10e   : > { %1028 = vst [vmem:[%s2247_s22 + $0x70] sm:$0xff] %v1012_v55 }
 0x10f   : > { %1029 = vst [vmem:[%s2247_s22 + $0x78] sm:$0xff] %v1013_v43 }
 0x110   : > { %1377 = shalt.err (!%p1374_p7)
}
 0x111   : > { %s1425_s17 = smov 128   ;;  %s1426_s23 = smov 256  }
 0x112   : > { %s1427_s25 = smov 8  }
 0x113   : > { %1201 = dma.vmem_to_hbm [thread:$0]  (%p1499_p11), %s1043_s19, 2048, %s1045_s1, %s1031_s24, %s1425_s17, %s1426_s23, %s1427_s25  }
 0x114 PF: > { %s1059_s7 = sand.u32 1, %s1408_s15   ;;  %p1214_p8 = pnand %p1168_p9, %p1503_p12 }
 0x115   : > { %s1060_s6 = scalar_lea.sflag [#allocation5], %s1059_s7 }
 0x116   : > { %p1215_p10 = pneg %p1214_p8 }
 0x118   : > { %1403 = dma.done.wait (%p1215_p10), %s1060_s6, 2048  }
 0x119   : > { %1405 = vsyncadd (%p1215_p10), %s1060_s6, 4294965248  ;;  %s2529_s5 = sld [smem:[#allocation13_spill]]  ;;  %p20_p0 = scmp.ge.s32.totalorder %s1478_s21, 4  }
 0x11a   : > { %s2530_s17 = sld [smem:[#allocation14_spill]]  ;;  %s2531_s15 = smov %s1412_s16 }
 0x11b   : > { %s2533_s18 = smov %s1478_s21  ;;  %22 = sbr.rel (!%p20_p0) target bundleno = 10 (0xa), region = 110 }
 0x11f   : > { %s2532_s16 = smov %s2529_s5 }
 0x120   :  { %1066 = vsyncpa [#allocation4], 1 }
 0x121   :  { %1068 = vsyncpa [#allocation4 + $0x1], 1 }
 0x122   :  { %1069 = vsyncpa [#allocation7], 1 }
 0x123   :  { %1071 = vsyncpa [#allocation7 + $0x1], 1 }
 0x124   :  { %1072 = vsyncpa [#allocation5], 1 }
 0x125   :  { %1074 = vsyncpa [#allocation5 + $0x1], 1 }

</bundles_post_ra>
